<compile_context>
chip_gen: v6e
topology: v6e:2x2x1
jax: 0.10.0
libtpu: 0.0.40
codegen_flags: <defaults>
</compile_context>

<pallas_src>
import functools

import jax
import jax.numpy as jnp
from jax import lax
from jax.experimental import pallas as pl
from jax.experimental.pallas import tpu as pltpu


# ---------------------------------------------------------------------------
# Kernel: fused log_softmax + gather + focal weighting + per-block partial sum
# ---------------------------------------------------------------------------
def _focal_loss_kernel(n_valid_ref, logits_ref, target_ref, alpha_ref, out_ref,
                       *, gamma, use_alpha):
    i = pl.program_id(0)
    tm = logits_ref.shape[0]

    # Upcast in-kernel (VPU) — bf16 inputs never need an HBM f32 copy.
    x = logits_ref[...].astype(jnp.float32)                     # (TM, C)

    # log_softmax pieces, row-wise (== F.log_softmax(input) for 2D input).
    m = jnp.max(x, axis=-1, keepdims=True)
    z = x - m
    lse = jnp.log(jnp.sum(jnp.exp(z), axis=-1, keepdims=True))  # (TM, 1)

    # Gather z (and alpha) at the target class with a boolean select + row
    # reduce: no full (TM,C) logp tile, no f32 one-hot multiply.
    tgt = target_ref[...]                                       # (TM, 1) int32
    col = lax.broadcasted_iota(jnp.int32, z.shape, 1)
    hit = col == tgt                                            # (TM, C) bool
    z_t = jnp.sum(jnp.where(hit, z, 0.0), axis=-1, keepdims=True)
    logpt = z_t - lse                                           # (TM, 1)

    if use_alpha:
        at = jnp.sum(jnp.where(hit, alpha_ref[...], 0.0), axis=-1, keepdims=True)
        logpt = logpt * at

    # (1 - pt) ** gamma, specialized at trace time.  pt uses the *pre-alpha*
    # logpt (z_t - lse), matching the module.
    if gamma == 0:
        loss = -logpt
    else:
        pt = jnp.exp(z_t - lse)
        if float(gamma).is_integer():
            focal = jnp.ones_like(pt)
            for _ in range(int(gamma)):
                focal = focal * (1.0 - pt)
        else:
            focal = (1.0 - pt) ** gamma
        loss = -focal * logpt                                   # (TM, 1)

    # Mask rows past n_valid (ragged last block holds undefined data; this is
    # a select, so NaN/Inf garbage is discarded — do NOT turn into a multiply).
    nv = n_valid_ref[0]
    row = i * tm + lax.broadcasted_iota(jnp.int32, loss.shape, 0)
    loss = jnp.where(row < nv, loss, 0.0)

    partial = jnp.sum(loss)                                     # scalar f32

    # Lane-dense per-block output slab: partial sum at [0,0], zeros elsewhere.
    r8 = lax.broadcasted_iota(jnp.int32, (8, 128), 0)
    c8 = lax.broadcasted_iota(jnp.int32, (8, 128), 1)
    out_ref[...] = jnp.where((r8 == 0) & (c8 == 0), partial, 0.0)


# ---------------------------------------------------------------------------
# Wrapper (host-side glue: dim>2 reshape, alpha normalization, tiling)
# ---------------------------------------------------------------------------
def focal_loss(logits, target, *, gamma=0.0, alpha=None, size_average=True,
               block_rows=1024):
    logits = jnp.asarray(logits)
    target = jnp.asarray(target)

    # input.view(N, C, -1).transpose(1, 2).contiguous().view(-1, C)
    # TODO(synk): for ndim > 2 this host-side transpose is an XLA relayout that
    # reads + rewrites the whole tensor in HBM before the kernel runs; a
    # (N, C, L)-native 3-D BlockSpec would avoid that extra round trip.
    if logits.ndim > 2:
        n0, c0 = logits.shape[0], logits.shape[1]
        logits = logits.reshape(n0, c0, -1)
        logits = jnp.transpose(logits, (0, 2, 1)).reshape(-1, c0)
    n, c = logits.shape
    target = target.reshape(n, 1).astype(jnp.int32)

    # alpha handling mirrors FocalLoss.__init__ (float -> [a, 1-a], list -> vec)
    use_alpha = alpha is not None
    if alpha is None:
        alpha_vec = jnp.ones((1, c), jnp.float32)
    elif isinstance(alpha, (float, int)) and not isinstance(alpha, bool):
        # Binary alpha: matches torch only when targets are in {0, 1}; classes
        # >= 2 get alpha = 0 here (the torch gather would raise instead).
        alpha_vec = (jnp.zeros((c,), jnp.float32)
                     .at[0].set(float(alpha))
                     .at[1].set(1.0 - float(alpha)))[None, :]
    else:
        # Per-class alpha list; entries beyond len(alpha) are zero (the torch
        # gather would raise for targets outside the list).
        a = jnp.asarray(alpha, jnp.float32).reshape(-1)
        alpha_vec = jnp.zeros((c,), jnp.float32).at[: a.shape[0]].set(a[:c])[None, :]

    # --- tile sizing: biggest row tile that keeps 2 pipeline buffers of the
    # logits tile + ~8 f32-sized in-kernel temporaries well inside scoped VMEM
    # on every generation (v7x has only 64 MiB physical). ---
    itemsize = jnp.dtype(logits.dtype).itemsize
    align = max(8, 32 // itemsize)            # sublane alignment incl. packing
    bytes_per_row = c * (2 * itemsize + 8 * 4)
    tm_cap = max(align, ((36 * 1024 * 1024) // bytes_per_row) // align * align)
    tm = min(block_rows, tm_cap)
    if n < tm:
        tm = max(align, ((n + align - 1) // align) * align)
    num_blocks = pl.cdiv(n, tm)

    vmem_est = (2 * tm * c * itemsize + 8 * tm * c * 4
                + 4 * (2 * tm + 2 * c) + 2 * 8 * 128 * 4)
    vmem_limit = int(min(max(vmem_est, 32 * 1024 * 1024), 48 * 1024 * 1024))

    kernel = functools.partial(_focal_loss_kernel,
                               gamma=gamma, use_alpha=use_alpha)

    partials = pl.pallas_call(
        kernel,
        grid=(num_blocks,),
        in_specs=[
            pl.BlockSpec(memory_space=pltpu.MemorySpace.SMEM),  # n_valid scalar
            pl.BlockSpec((tm, c), lambda i: (i, 0)),            # logits block
            pl.BlockSpec((tm, 1), lambda i: (i, 0)),            # targets block
            pl.BlockSpec((1, c), lambda i: (0, 0)),             # alpha (replicated)
        ],
        out_specs=pl.BlockSpec((None, 8, 128), lambda i: (i, 0, 0)),
        out_shape=jax.ShapeDtypeStruct((num_blocks, 8, 128), jnp.float32),
        compiler_params=pltpu.CompilerParams(
            dimension_semantics=("parallel",),     # independent per-block partials
            vmem_limit_bytes=vmem_limit),
    )(jnp.array([n], jnp.int32), logits, target, alpha_vec)

    total = jnp.sum(partials)          # tiny XLA reduce over per-block partials
    return total / n if size_average else total


# ---------------------------------------------------------------------------
# Pure-JAX reference (mirrors the PyTorch forward semantics)
# ---------------------------------------------------------------------------
def focal_loss_reference(logits, target, *, gamma=0.0, alpha=None,
                         size_average=True):
    logits = jnp.asarray(logits, jnp.float32)
    target = jnp.asarray(target)
    if logits.ndim > 2:
        n0, c = logits.shape[0], logits.shape[1]
        logits = logits.reshape(n0, c, -1)
        logits = jnp.transpose(logits, (0, 2, 1)).reshape(-1, c)
    target = target.reshape(-1)
    logp = jax.nn.log_softmax(logits, axis=-1)
    logpt = jnp.take_along_axis(logp, target[:, None], axis=1)[:, 0]
    pt = jnp.exp(logpt)
    if alpha is not None:
        if isinstance(alpha, (float, int)) and not isinstance(alpha, bool):
            avec = jnp.array([float(alpha), 1.0 - float(alpha)], jnp.float32)
        else:
            avec = jnp.asarray(alpha, jnp.float32)
        logpt = logpt * avec[target]
    loss = -((1.0 - pt) ** gamma) * logpt
    return loss.mean() if size_average else loss.sum()


if __name__ == "__main__":
    key = jax.random.PRNGKey(0)
    k1, k2, k3, k4, k5 = jax.random.split(key, 5)

    # Case 1: 2D logits, per-class alpha list, gamma=2, mean reduction
    # (odd N exercises the unpadded ragged-last-block masking path).
    N, C = 250, 64
    logits1 = jax.random.normal(k1, (N, C), jnp.float32)
    target1 = jax.random.randint(k2, (N,), 0, C, dtype=jnp.int32)
    alpha1 = [float(v) for v in jax.random.uniform(k3, (C,), jnp.float32, 0.1, 1.0)]

    out1 = jax.block_until_ready(
        focal_loss(logits1, target1, gamma=2, alpha=alpha1, size_average=True))
    ref1 = focal_loss_reference(logits1, target1, gamma=2, alpha=alpha1,
                                size_average=True)
    assert jnp.allclose(out1, ref1, rtol=1e-4, atol=1e-4), (float(out1), float(ref1))

    # Case 2: dim>2 input (binary, segmentation-style), float alpha,
    # fractional gamma, sum reduction.
    logits2 = jax.random.normal(k4, (2, 2, 8, 8), jnp.float32)
    target2 = jax.random.randint(k5, (2, 8, 8), 0, 2, dtype=jnp.int32)
    out2 = jax.block_until_ready(
        focal_loss(logits2, target2, gamma=1.5, alpha=0.25, size_average=False))
    ref2 = focal_loss_reference(logits2, target2, gamma=1.5, alpha=0.25,
                                size_average=False)
    assert jnp.allclose(out2, ref2, rtol=1e-4, atol=1e-4), (float(out2), float(ref2))

    # Case 3: module defaults (gamma=0, alpha=None) -> mean NLL.
    out3 = jax.block_until_ready(focal_loss(logits1, target1))
    ref3 = focal_loss_reference(logits1, target1)
    assert jnp.allclose(out3, ref3, rtol=1e-4, atol=1e-4), (float(out3), float(ref3))

    # Case 4: bf16 logits go through the kernel in their native dtype
    # (no host-side f32 copy); upcast happens on the VPU in-kernel.
    logits4 = logits1.astype(jnp.bfloat16)
    out4 = jax.block_until_ready(
        focal_loss(logits4, target1, gamma=2, alpha=alpha1, size_average=True))
    ref4 = focal_loss_reference(logits4, target1, gamma=2, alpha=alpha1,
                                size_average=True)
    assert jnp.allclose(out4, ref4, rtol=1e-3, atol=1e-3), (float(out4), float(ref4))

    print("KERNEL_OK")
</pallas_src>

<mosaic_0001>
module attributes {stable_mosaic.version = 11 : i64} {
  func.func @_focal_loss_kernel(%arg0: i32, %arg1: memref<1xi32, #tpu.memory_space<smem>>, %arg2: memref<256x64xf32, #tpu.memory_space<vmem>>, %arg3: memref<256x1xi32, #tpu.memory_space<vmem>>, %arg4: memref<1x64xf32, #tpu.memory_space<vmem>>, %arg5: memref<1x8x128xf32, #tpu.memory_space<vmem>>) attributes {dimension_semantics = [#tpu.dimension_semantics<parallel>], iteration_bounds = array<i64: 1>, scalar_prefetch = 0 : i64, scratch_operands = 0 : i64, tpu.core_type = #tpu.core_type<tc>, window_params = [{transform_indices = @transform_0, window_bounds = array<i64: 1>}, {transform_indices = @transform_1, window_bounds = array<i64: 256, 64>}, {transform_indices = @transform_2, window_bounds = array<i64: 256, 1>}, {pipeline_mode = #tpu.pipeline_mode<synchronous>, transform_indices = @transform_3, window_bounds = array<i64: 1, 64>}, {transform_indices = @transform_4, window_bounds = array<i64: 1, 8, 128>}]} {
    %c0 = arith.constant 0 : index
    %c0_0 = arith.constant 0 : index
    %0 = vector.load %arg2[%c0, %c0_0] : memref<256x64xf32, #tpu.memory_space<vmem>>, vector<256x64xf32>
    %cst = arith.constant dense<0xFF800000> : vector<256xf32>
    %1 = vector.multi_reduction <maximumf>, %0, %cst [1] : vector<256x64xf32> to vector<256xf32>
    %2 = vector.shape_cast %1 : vector<256xf32> to vector<256x1xf32>
    %3 = vector.broadcast %2 : vector<256x1xf32> to vector<256x64xf32>
    %4 = arith.subf %0, %3 : vector<256x64xf32>
    %5 = math.exp %4 : vector<256x64xf32>
    %cst_1 = arith.constant dense<0.000000e+00> : vector<256xf32>
    %6 = vector.multi_reduction <add>, %5, %cst_1 [1] : vector<256x64xf32> to vector<256xf32>
    %7 = vector.shape_cast %6 : vector<256xf32> to vector<256x1xf32>
    %8 = math.log %7 : vector<256x1xf32>
    %c0_2 = arith.constant 0 : index
    %c0_3 = arith.constant 0 : index
    %9 = vector.load %arg3[%c0_2, %c0_3] : memref<256x1xi32, #tpu.memory_space<vmem>>, vector<256x1xi32>
    %10 = tpu.iota {dimensions = array<i32: 1>} : vector<256x64xi32>
    %11 = vector.broadcast %9 : vector<256x1xi32> to vector<256x64xi32>
    %12 = arith.cmpi eq, %10, %11 : vector<256x64xi32>
    %cst_4 = arith.constant 0.000000e+00 : f32
    %13 = vector.broadcast %cst_4 : f32 to vector<256x64xf32>
    %14 = arith.select %12, %4, %13 : vector<256x64xi1>, vector<256x64xf32>
    %cst_5 = arith.constant dense<0.000000e+00> : vector<256xf32>
    %15 = vector.multi_reduction <add>, %14, %cst_5 [1] : vector<256x64xf32> to vector<256xf32>
    %16 = vector.shape_cast %15 : vector<256xf32> to vector<256x1xf32>
    %17 = arith.subf %16, %8 : vector<256x1xf32>
    %c0_6 = arith.constant 0 : index
    %c0_7 = arith.constant 0 : index
    %18 = vector.load %arg4[%c0_6, %c0_7] : memref<1x64xf32, #tpu.memory_space<vmem>>, vector<1x64xf32>
    %cst_8 = arith.constant 0.000000e+00 : f32
    %19 = vector.shape_cast %18 : vector<1x64xf32> to vector<1x64xf32>
    %20 = vector.broadcast %19 : vector<1x64xf32> to vector<256x64xf32>
    %21 = vector.broadcast %cst_8 : f32 to vector<256x64xf32>
    %22 = arith.select %12, %20, %21 : vector<256x64xi1>, vector<256x64xf32>
    %cst_9 = arith.constant dense<0.000000e+00> : vector<256xf32>
    %23 = vector.multi_reduction <add>, %22, %cst_9 [1] : vector<256x64xf32> to vector<256xf32>
    %24 = vector.shape_cast %23 : vector<256xf32> to vector<256x1xf32>
    %25 = arith.mulf %17, %24 : vector<256x1xf32>
    %26 = arith.subf %16, %8 : vector<256x1xf32>
    %27 = math.exp %26 : vector<256x1xf32>
    %cst_10 = arith.constant 1.000000e+00 : f32
    %28 = vector.broadcast %cst_10 : f32 to vector<256x1xf32>
    %cst_11 = arith.constant 1.000000e+00 : f32
    %29 = vector.broadcast %cst_11 : f32 to vector<256x1xf32>
    %30 = arith.subf %29, %27 : vector<256x1xf32>
    %31 = arith.mulf %28, %30 : vector<256x1xf32>
    %cst_12 = arith.constant 1.000000e+00 : f32
    %32 = vector.broadcast %cst_12 : f32 to vector<256x1xf32>
    %33 = arith.subf %32, %27 : vector<256x1xf32>
    %34 = arith.mulf %31, %33 : vector<256x1xf32>
    %cst_13 = arith.constant 0.000000e+00 : f32
    %35 = vector.broadcast %cst_13 : f32 to vector<256x1xf32>
    %36 = arith.subf %35, %34 : vector<256x1xf32>
    %37 = arith.mulf %36, %25 : vector<256x1xf32>
    %c0_14 = arith.constant 0 : index
    %38 = memref.load %arg1[%c0_14] : memref<1xi32, #tpu.memory_space<smem>>
    %c256_i32 = arith.constant 256 : i32
    %39 = arith.muli %arg0, %c256_i32 : i32
    %40 = tpu.iota {dimensions = array<i32: 0>} : vector<256x1xi32>
    %41 = vector.broadcast %39 : i32 to vector<256x1xi32>
    %42 = arith.addi %41, %40 : vector<256x1xi32>
    %43 = vector.broadcast %38 : i32 to vector<256x1xi32>
    %44 = arith.cmpi slt, %42, %43 : vector<256x1xi32>
    %cst_15 = arith.constant 0.000000e+00 : f32
    %45 = vector.broadcast %cst_15 : f32 to vector<256x1xf32>
    %46 = arith.select %44, %37, %45 : vector<256x1xi1>, vector<256x1xf32>
    %47 = vector.shape_cast %46 : vector<256x1xf32> to vector<1x256x1xf32>
    %cst_16 = arith.constant dense<0.000000e+00> : vector<1xf32>
    %48 = vector.multi_reduction <add>, %47, %cst_16 [1, 2] : vector<1x256x1xf32> to vector<1xf32>
    %49 = vector.shape_cast %48 : vector<1xf32> to vector<1x1x1xf32>
    %50 = vector.extract %49[0, 0, 0] : f32 from vector<1x1x1xf32>
    %51 = tpu.iota {dimensions = array<i32: 0>} : vector<8x128xi32>
    %52 = tpu.iota {dimensions = array<i32: 1>} : vector<8x128xi32>
    %c0_i32 = arith.constant 0 : i32
    %53 = vector.broadcast %c0_i32 : i32 to vector<8x128xi32>
    %54 = arith.cmpi eq, %51, %53 : vector<8x128xi32>
    %c0_i32_17 = arith.constant 0 : i32
    %55 = vector.broadcast %c0_i32_17 : i32 to vector<8x128xi32>
    %56 = arith.cmpi eq, %52, %55 : vector<8x128xi32>
    %57 = arith.andi %54, %56 : vector<8x128xi1>
    %cst_18 = arith.constant 0.000000e+00 : f32
    %58 = vector.broadcast %50 : f32 to vector<8x128xf32>
    %59 = vector.broadcast %cst_18 : f32 to vector<8x128xf32>
    %60 = arith.select %57, %58, %59 : vector<8x128xi1>, vector<8x128xf32>
    %c0_19 = arith.constant 0 : index
    %c0_20 = arith.constant 0 : index
    %c0_21 = arith.constant 0 : index
    %61 = vector.load %arg5[%c0_19, %c0_20, %c0_21] : memref<1x8x128xf32, #tpu.memory_space<vmem>>, vector<1x8x128xf32>
    %62 = vector.shape_cast %61 : vector<1x8x128xf32> to vector<8x128xf32>
    %63 = vector.shape_cast %60 : vector<8x128xf32> to vector<1x8x128xf32>
    tpu.vector_store %arg5[%c0_19, %c0_20, %c0_21], %63 {strides = array<i32>} : memref<1x8x128xf32, #tpu.memory_space<vmem>>, vector<1x8x128xf32>,
    return
  }
  func.func @transform_0(%arg0: i32) -> i32 {
    %c0_i32 = arith.constant 0 : i32
    %c0_i32_0 = arith.constant 0 : i32
    return %c0_i32 : i32
  }
  func.func @transform_1(%arg0: i32) -> (i32, i32) {
    %c0_i32 = arith.constant 0 : i32
    %c0_i32_0 = arith.constant 0 : i32
    return %arg0, %c0_i32 : i32, i32
  }
  func.func @transform_2(%arg0: i32) -> (i32, i32) {
    %c0_i32 = arith.constant 0 : i32
    %c0_i32_0 = arith.constant 0 : i32
    return %arg0, %c0_i32 : i32, i32
  }
  func.func @transform_3(%arg0: i32) -> (i32, i32) {
    %c0_i32 = arith.constant 0 : i32
    %c0_i32_0 = arith.constant 0 : i32
    %c0_i32_1 = arith.constant 0 : i32
    return %c0_i32, %c0_i32_0 : i32, i32
  }
  func.func @transform_4(%arg0: i32) -> (i32, i32, i32) {
    %c0_i32 = arith.constant 0 : i32
    %c0_i32_0 = arith.constant 0 : i32
    %c0_i32_1 = arith.constant 0 : i32
    return %arg0, %c0_i32, %c0_i32_0 : i32, i32, i32
  }
}

</mosaic_0001>

<bundles_post_ra>
// kernel: tpu_custom_call.1
= control target key start
LH: loop header
LB: loop body
LE: loop exit
PB: predicated region body
PF: predicated region fallthrough
CT: control target
= control target key end

     0   :  { %vm51_vm0 = vcmask 523264   ;;  %s3002_s0 = inlined_call_operand.<no memory space> [shape: s32[1], index: 0, kind: input, shape index: {}]   ;;  %s3003_s1 = inlined_call_operand.vmem [shape: f32[250,64], index: 1, kind: input, shape index: {}]   ;;  %s3004_s2 = inlined_call_operand.vmem [shape: s32[250,1], index: 2, kind: input, shape index: {}]   ;;  %s3005_s3 = inlined_call_operand.vmem [shape: f32[1,64], index: 3, kind: input, shape index: {}]   ;;  %s3006_s4 = inlined_call_operand.hbm [shape: f32[1,8,128], index: 4, kind: output, shape index: {}]  }
   0x1   :  { %v1562_v0 = vld [vmem:[%s3003_s1] sm:$0xff]  ;;  %v1567_v1 = vld [vmem:[%s3003_s1 + $0x10] sm:$0xff]  ;;  %v1572_v2 = vld [vmem:[%s3003_s1 + $0x8] sm:$0xff] }
   0x2   :  { %v52_v3 = vsel %vm51_vm0, %v1562_v0, -inf  ;;  %v58_v4 = vsel %vm51_vm0, %v1567_v1, -inf  ;;  %v1581_v5 = vld [vmem:[%s3003_s1 + $0x18] sm:$0xff]  ;;  %v55_v6 = vsel %vm51_vm0, %v1572_v2, -inf  ;;  %v1590_v8 = vld [vmem:[%s3003_s1 + $0x20] sm:$0xff]  ;;  %v1595_v9 = vld [vmem:[%s3003_s1 + $0x28] sm:$0xff] }
   0x3   :  { %53 = vmax.xlane.f32.xlu0 %v52_v3  ;;  %59 = vmax.xlane.f32.xlu1 %v58_v4  ;;  %v61_v7 = vsel %vm51_vm0, %v1581_v5, -inf  ;;  %v64_v10 = vsel %vm51_vm0, %v1590_v8, -inf  ;;  %v67_v11 = vsel %vm51_vm0, %v1595_v9, -inf  ;;  %v1604_v12 = vld [vmem:[%s3003_s1 + $0x38] sm:$0xff]  ;;  %v1609_v13 = vld [vmem:[%s3003_s1 + $0x30] sm:$0xff] }
   0x7   :  { %56 = vmax.xlane.f32.xlu0 %v55_v6  ;;  %62 = vmax.xlane.f32.xlu1 %v61_v7 }
   0x8   :  { %10 = vsyncpa [#allocation4], 0  ;;  %v73_v14 = vsel %vm51_vm0, %v1604_v12, -inf  ;;  %v70_v15 = vsel %vm51_vm0, %v1609_v13, -inf  ;;  %v1618_v16 = vld [vmem:[%s3003_s1 + $0x48] sm:$0xff]  ;;  %v1623_v17 = vld [vmem:[%s3003_s1 + $0x40] sm:$0xff] }
   0x9   :  { %v79_v18 = vsel %vm51_vm0, %v1618_v16, -inf  ;;  %v76_v19 = vsel %vm51_vm0, %v1623_v17, -inf  ;;  %v1632_v20 = vld [vmem:[%s3003_s1 + $0x58] sm:$0xff]  ;;  %v1637_v21 = vld [vmem:[%s3003_s1 + $0x50] sm:$0xff]  ;;  %v1646_v24 = vld [vmem:[%s3003_s1 + $0x68] sm:$0xff]  ;;  %v1532_v50 = vmov 0  }
   0xa   :  { %v85_v22 = vsel %vm51_vm0, %v1632_v20, -inf  ;;  %v82_v23 = vsel %vm51_vm0, %v1637_v21, -inf  ;;  %v1651_v25 = vld [vmem:[%s3003_s1 + $0x60] sm:$0xff]  ;;  %v91_v26 = vsel %vm51_vm0, %v1646_v24, -inf  ;;  %v1660_v28 = vld [vmem:[%s3003_s1 + $0x78] sm:$0xff]  ;;  %v1665_v29 = vld [vmem:[%s3003_s1 + $0x70] sm:$0xff]  ;;  %1317 = vset.pattern.permute.xlu1 %v1532_v50  ;;  %1316 = vset.pattern.permute.xlu0 %v1532_v50 }
   0xb   :  { %65 = vmax.xlane.f32.xlu0 %v64_v10  ;;  %68 = vmax.xlane.f32.xlu1 %v67_v11  ;;  %v88_v27 = vsel %vm51_vm0, %v1651_v25, -inf  ;;  %v97_v30 = vsel %vm51_vm0, %v1660_v28, -inf  ;;  %v94_v31 = vsel %vm51_vm0, %v1665_v29, -inf  ;;  %v1674_v32 = vld [vmem:[%s3003_s1 + $0x88] sm:$0xff]  ;;  %v1679_v33 = vld [vmem:[%s3003_s1 + $0x80] sm:$0xff]  ;;  %v1688_v36 = vld [vmem:[%s3003_s1 + $0x98] sm:$0xff] }
   0xc   :  { %v103_v34 = vsel %vm51_vm0, %v1674_v32, -inf  ;;  %v100_v35 = vsel %vm51_vm0, %v1679_v33, -inf  ;;  %v1693_v37 = vld [vmem:[%s3003_s1 + $0x90] sm:$0xff]  ;;  %v109_v38 = vsel %vm51_vm0, %v1688_v36, -inf  ;;  %v1702_v40 = vld [vmem:[%s3003_s1 + $0xa8] sm:$0xff]  ;;  %v1707_v41 = vld [vmem:[%s3003_s1 + $0xa0] sm:$0xff] }
   0xd   :  { %v106_v39 = vsel %vm51_vm0, %v1693_v37, -inf  ;;  %v115_v42 = vsel %vm51_vm0, %v1702_v40, -inf  ;;  %v112_v43 = vsel %vm51_vm0, %v1707_v41, -inf  ;;  %v1716_v44 = vld [vmem:[%s3003_s1 + $0xb8] sm:$0xff]  ;;  %v1721_v45 = vld [vmem:[%s3003_s1 + $0xb0] sm:$0xff]  ;;  %v1730_v48 = vld [vmem:[%s3003_s1 + $0xc8] sm:$0xff] }
   0xe   :  { %v121_v46 = vsel %vm51_vm0, %v1716_v44, -inf  ;;  %v118_v47 = vsel %vm51_vm0, %v1721_v45, -inf  ;;  %v1735_v49 = vld [vmem:[%s3003_s1 + $0xc0] sm:$0xff]  ;;  %v127_v51 = vsel %vm51_vm0, %v1730_v48, -inf  ;;  %v1744_v53 = vld [vmem:[%s3003_s1 + $0xd8] sm:$0xff]  ;;  %v1749_v54 = vld [vmem:[%s3003_s1 + $0xd0] sm:$0xff] }
   0xf   :  { %74 = vmax.xlane.f32.xlu1 %v73_v14  ;;  %71 = vmax.xlane.f32.xlu0 %v70_v15  ;;  %v124_v52 = vsel %vm51_vm0, %v1735_v49, -inf  ;;  %v133_v55 = vsel %vm51_vm0, %v1744_v53, -inf  ;;  %v130_v56 = vsel %vm51_vm0, %v1749_v54, -inf  ;;  %v1758_v57 = vld [vmem:[%s3003_s1 + $0xf0] sm:$0xff]  ;;  %v1763_v58 = vld [vmem:[%s3003_s1 + $0xe0] sm:$0xff]  ;;  %v1772_v61 = vld [vmem:[%s3003_s1 + $0xf8] sm:$0xff] }
  0x10   :  { %v142_v59 = vsel %vm51_vm0, %v1758_v57, -inf  ;;  %v136_v60 = vsel %vm51_vm0, %v1763_v58, -inf  ;;  %v1777_v62 = vld [vmem:[%s3003_s1 + $0xe8] sm:$0xff]  ;;  %v145_v63 = vsel %vm51_vm0, %v1772_v61, -inf }
  0x11   :  { %v139_v3 = vsel %vm51_vm0, %v1777_v62, -inf }
  0x13   :  { %80 = vmax.xlane.f32.xlu1 %v79_v18  ;;  %77 = vmax.xlane.f32.xlu0 %v76_v19 }
  0x17   :  { %86 = vmax.xlane.f32.xlu1 %v85_v22  ;;  %83 = vmax.xlane.f32.xlu0 %v82_v23 }
  0x1b   :  { %92 = vmax.xlane.f32.xlu1 %v91_v26  ;;  %89 = vmax.xlane.f32.xlu0 %v88_v27 }
  0x1f   :  { %98 = vmax.xlane.f32.xlu1 %v97_v30  ;;  %95 = vmax.xlane.f32.xlu0 %v94_v31 }
  0x23   :  { %104 = vmax.xlane.f32.xlu1 %v103_v34  ;;  %101 = vmax.xlane.f32.xlu0 %v100_v35 }
  0x27   :  { %110 = vmax.xlane.f32.xlu1 %v109_v38  ;;  %107 = vmax.xlane.f32.xlu0 %v106_v39 }
  0x2b   :  { %116 = vmax.xlane.f32.xlu1 %v115_v42  ;;  %113 = vmax.xlane.f32.xlu0 %v112_v43 }
  0x2f   :  { %122 = vmax.xlane.f32.xlu1 %v121_v46  ;;  %119 = vmax.xlane.f32.xlu0 %v118_v47 }
  0x33   :  { %128 = vmax.xlane.f32.xlu1 %v127_v51  ;;  %125 = vmax.xlane.f32.xlu0 %v124_v52  ;;  %v404_v51 = vld [vmem:[%s3004_s2] sm:$0xff]  ;;  %v405_v52 = vld [vmem:[%s3004_s2 + $0x8] sm:$0xff] }
  0x37   :  { %134 = vmax.xlane.f32.xlu1 %v133_v55  ;;  %131 = vmax.xlane.f32.xlu0 %v130_v56  ;;  %v406_v55 = vld [vmem:[%s3004_s2 + $0x10] sm:$0xff]  ;;  %v415_v56 = vld [vmem:[%s3004_s2 + $0x58] sm:$0xff] }
  0x3b   :  { %143 = vmax.xlane.f32.xlu1 %v142_v59  ;;  %137 = vmax.xlane.f32.xlu0 %v136_v60  ;;  %v407_v59 = vld [vmem:[%s3004_s2 + $0x18] sm:$0xff]  ;;  %v417_v60 = vld [vmem:[%s3004_s2 + $0x68] sm:$0xff] }
  0x3f   :  { %146 = vmax.xlane.f32.xlu1 %v145_v63  ;;  %140 = vmax.xlane.f32.xlu0 %v139_v3  ;;  %v408_v63 = vld [vmem:[%s3004_s2 + $0x20] sm:$0xff]  ;;  %v418_v3 = vld [vmem:[%s3004_s2 + $0x70] sm:$0xff] }
  0x8c   :  { %v54_v4 = vpop.xlane.xlu0 %53  ;;  %v60_v6 = vpop.xlane.xlu1 %59 }
  0x8d   :  { %v1784_v7 = vsub.f32 %v1562_v0, %v54_v4  ;;  %v1787_v10 = vsub.f32 %v1567_v1, %v60_v6  ;;  %v409_v4 = vld [vmem:[%s3004_s2 + $0x28] sm:$0xff]  ;;  %v419_v6 = vld [vmem:[%s3004_s2 + $0x78] sm:$0xff] }
  0x8f   :  { %v180_v11 = vmul.f32 1.442695, %v1784_v7  ;;  %v184_v14 = vmul.f32 1.442695, %v1787_v10 }
  0x90   :  { %v57_v15 = vpop.xlane.xlu0 %56  ;;  %v63_v18 = vpop.xlane.xlu1 %62 }
  0x91   :  { %1318 = vpow2.f32 %v180_v11  ;;  %v1792_v19 = vsub.f32 %v1572_v2, %v57_v15  ;;  %v1795_v22 = vsub.f32 %v1581_v5, %v63_v18  ;;  %v410_v11 = vld [vmem:[%s3004_s2 + $0x30] sm:$0xff]  ;;  %v411_v15 = vld [vmem:[%s3004_s2 + $0x38] sm:$0xff] }
  0x92   :  { %1320 = vpow2.f32 %v184_v14  ;;  %v421_v14 = vld [vmem:[%s3004_s2 + $0x88] sm:$0xff]  ;;  %v423_v18 = vld [vmem:[%s3004_s2 + $0x98] sm:$0xff] }
  0x93   :  { %v182_v0 = vmul.f32 1.442695, %v1792_v19  ;;  %v186_v23 = vmul.f32 1.442695, %v1795_v22 }
  0x94   :  { %v66_v1 = vpop.xlane.xlu0 %65  ;;  %v69_v26 = vpop.xlane.xlu1 %68 }
  0x95   :  { %1322 = vpow2.f32 %v182_v0  ;;  %v1800_v27 = vsub.f32 %v1590_v8, %v66_v1  ;;  %v1803_v30 = vsub.f32 %v1595_v9, %v69_v26  ;;  %v412_v0 = vld [vmem:[%s3004_s2 + $0x40] sm:$0xff]  ;;  %v413_v1 = vld [vmem:[%s3004_s2 + $0x48] sm:$0xff]  ;;  %v427_v26 = vld [vmem:[%s3004_s2 + $0xb8] sm:$0xff] }
  0x96   :  { %1324 = vpow2.f32 %v186_v23  ;;  %v425_v23 = vld [vmem:[%s3004_s2 + $0xa8] sm:$0xff] }
  0x97   :  { %v188_v2 = vmul.f32 1.442695, %v1800_v27  ;;  %v190_v5 = vmul.f32 1.442695, %v1803_v30 }
  0x99   :  { %1326 = vpow2.f32 %v188_v2  ;;  %v1867_v2 = vpop.xlane.xlu1 %74 }
  0x9a   :  { %1328 = vpow2.f32 %v190_v5  ;;  %v414_v5 = vld [vmem:[%s3004_s2 + $0x50] sm:$0xff] }
  0x9e   :  { %v1319_v31 = vpop.eup %1318 }
  0x9f   :  { %v1321_v34 = vpop.eup %1320  ;;  %v244_v35 = vsel %vm51_vm0, %v1319_v31, 0.0  ;;  %v429_v31 = vld [vmem:[%s3004_s2 + $0xc8] sm:$0xff] }
  0xa0   :  { %245 = vadd.xlane.f32.xlu1 %v244_v35  ;;  %v250_v38 = vsel %vm51_vm0, %v1321_v34, 0.0  ;;  %v81_v34 = vpop.xlane.xlu1 %80  ;;  %v416_v35 = vld [vmem:[%s3004_s2 + $0x60] sm:$0xff] }
  0xa2   :  { %v1323_v39 = vpop.eup %1322 }
  0xa3   :  { %v1325_v8 = vpop.eup %1324  ;;  %v247_v42 = vsel %vm51_vm0, %v1323_v39, 0.0  ;;  %v72_v39 = vpop.xlane.xlu0 %71 }
  0xa4   :  { %251 = vadd.xlane.f32.xlu1 %v250_v38  ;;  %248 = vadd.xlane.f32.xlu0 %v247_v42  ;;  %v253_v9 = vsel %vm51_vm0, %v1325_v8, 0.0  ;;  %v430_v38 = vld [vmem:[%s3004_s2 + $0xd0] sm:$0xff]  ;;  %v420_v8 = vld [vmem:[%s3004_s2 + $0x80] sm:$0xff]  ;;  %v433_v42 = vld [vmem:[%s3004_s2 + $0xe8] sm:$0xff] }
  0xa6   :  { %v1327_v43 = vpop.eup %1326 }
  0xa7   :  { %v1329_v46 = vpop.eup %1328  ;;  %v256_v47 = vsel %vm51_vm0, %v1327_v43, 0.0  ;;  %v78_v43 = vpop.xlane.xlu0 %77 }
  0xa8   :  { %254 = vadd.xlane.f32.xlu0 %v253_v9  ;;  %257 = vadd.xlane.f32.xlu1 %v256_v47  ;;  %v259_v50 = vsel %vm51_vm0, %v1329_v46, 0.0  ;;  %v1887_v9 = vpop.xlane.xlu1 %86  ;;  %v422_v46 = vld [vmem:[%s3004_s2 + $0x90] sm:$0xff] }
  0xac   :  { %260 = vadd.xlane.f32.xlu1 %v259_v50  ;;  %v1892_v47 = vpop.xlane.xlu1 %92  ;;  %v84_v50 = vpop.xlane.xlu0 %83 }
  0xbd   :  { %439 = vperm.xlu1 %1317, %v404_v51   ;;  %v424_v51 = vld [vmem:[%s3004_s2 + $0xa0] sm:$0xff] }
  0xbe   :  { %442 = vperm.xlu0 %1316, %v405_v52   ;;  %v1898_v52 = vsub.f32 %v1609_v13, %v72_v39  ;;  %v428_v13 = vld [vmem:[%s3004_s2 + $0xc0] sm:$0xff] }
  0xc1   :  { %445 = vperm.xlu1 %1317, %v406_v55   ;;  %v426_v55 = vld [vmem:[%s3004_s2 + $0xb0] sm:$0xff] }
  0xc2   :  { %472 = vperm.xlu0 %1316, %v415_v56   ;;  %v192_v56 = vmul.f32 1.442695, %v1898_v52 }
  0xc4   :  { %1330 = vpow2.f32 %v192_v56 }
  0xc5   :  { %448 = vperm.xlu1 %1317, %v407_v59   ;;  %v1905_v59 = vsub.f32 %v1623_v17, %v78_v43  ;;  %v431_v17 = vld [vmem:[%s3004_s2 + $0xd8] sm:$0xff] }
  0xc6   :  { %478 = vperm.xlu0 %1316, %v417_v60   ;;  %v1907_v60 = vpop.xlane.xlu1 %98 }
  0xc9   :  { %451 = vperm.xlu1 %1317, %v408_v63   ;;  %v90_v63 = vpop.xlane.xlu0 %89 }
  0xca   :  { %481 = vperm.xlu0 %1316, %v418_v3   ;;  %v196_v3 = vmul.f32 1.442695, %v1905_v59 }
  0xcc   :  { %1332 = vpow2.f32 %v196_v3 }
  0xcd   :  { %454 = vperm.xlu1 %1317, %v409_v4   ;;  %v1914_v4 = vsub.f32 %v1618_v16, %v81_v34 }
  0xce   :  { %484 = vperm.xlu0 %1316, %v419_v6   ;;  %v1916_v6 = vpop.xlane.xlu1 %104 }
  0xd1   :  { %457 = vperm.xlu1 %1317, %v410_v11   ;;  %v1918_v11 = vpop.xlane.xlu0 %95 }
  0xd2   :  { %490 = vperm.xlu0 %1316, %v421_v14   ;;  %v198_v14 = vmul.f32 1.442695, %v1914_v4 }
  0xd4   :  { %1334 = vpow2.f32 %v198_v14 }
  0xd5   :  { %460 = vperm.xlu1 %1317, %v411_v15   ;;  %v432_v15 = vld [vmem:[%s3004_s2 + $0xe0] sm:$0xff]  ;;  %v1929_v16 = vpop.xlane.xlu0 %101 }
  0xd6   :  { %496 = vperm.xlu0 %1316, %v423_v18   ;;  %v1927_v18 = vpop.xlane.xlu1 %110 }
  0xd9   :  { %463 = vperm.xlu1 %1317, %v412_v0   ;;  %v434_v0 = vld [vmem:[%s3004_s2 + $0xf0] sm:$0xff] }
  0xda   :  { %502 = vperm.xlu0 %1316, %v425_v23   ;;  %v1331_v23 = vpop.eup %1330 }
  0xdb   :  { %v1333_v34 = vpop.eup %1332 }
  0xdd   :  { %466 = vperm.xlu1 %1317, %v413_v1   ;;  %v1934_v1 = vpop.xlane.xlu1 %116 }
  0xde   :  { %508 = vperm.xlu0 %1316, %v427_v26   ;;  %v1936_v26 = vpop.xlane.xlu0 %107 }
  0xe1   :  { %469 = vperm.xlu1 %1317, %v414_v5   ;;  %v435_v5 = vld [vmem:[%s3004_s2 + $0xf8] sm:$0xff] }
  0xe2   :  { %514 = vperm.xlu0 %1316, %v429_v31   ;;  %v262_v31 = vsel %vm51_vm0, %v1331_v23, 0.0  ;;  %v1945_v39 = vpop.xlane.xlu0 %113 }
  0xe5   :  { %475 = vperm.xlu1 %1317, %v416_v35   ;;  %v268_v35 = vsel %vm51_vm0, %v1333_v34, 0.0 }
  0xe6   :  { %517 = vperm.xlu0 %1316, %v430_v38   ;;  %v1943_v38 = vpop.xlane.xlu1 %122 }
  0xe9   :  { %487 = vperm.xlu1 %1317, %v420_v8   ;;  %v1335_v8 = vpop.eup %1334 }
  0xea   :  { %526 = vperm.xlu0 %1316, %v433_v42   ;;  %v271_v42 = vsel %vm51_vm0, %v1335_v8, 0.0  ;;  %v1948_v43 = vpop.xlane.xlu1 %128 }
  0xed   :  { %493 = vperm.xlu1 %1317, %v422_v46   ;;  %v1950_v46 = vpop.xlane.xlu0 %119 }
  0xf1   :  { %499 = vperm.xlu1 %1317, %v424_v51   ;;  %v1954_v51 = vsub.f32 %v1604_v12, %v1867_v2  ;;  %v1958_v56 = vpop.xlane.xlu0 %125  ;;  %v1974_v2 = vsub.f32 %v1637_v21, %v84_v50  ;;  %v1990_v21 = vsub.f32 %v1651_v25, %v90_v63 }
  0xf3   :  { %v200_v8 = vmul.f32 1.442695, %v1974_v2 }
  0xf5   :  { %505 = vperm.xlu1 %1317, %v426_v55   ;;  %v1956_v55 = vpop.xlane.xlu1 %134 }
  0xf9   :  { %511 = vperm.xlu1 %1317, %v428_v13   ;;  %v194_v13 = vmul.f32 1.442695, %v1954_v51  ;;  %v1961_v3 = vpop.xlane.xlu1 %143 }
  0xfb   :  { %1336 = vpow2.f32 %v194_v13  ;;  %v3007_v13 = vlaneseq }
  0xfc   :  { %1338 = vpow2.f32 %v200_v8 }
  0xfd   :  { %520 = vperm.xlu1 %1317, %v431_v17   ;;  %v1963_v17 = vpop.xlane.xlu0 %131  ;;  %v1965_v14 = vpop.xlane.xlu1 %146 }
 0x101   :  { %523 = vperm.xlu1 %1317, %v432_v15   ;;  %v1967_v15 = vpop.xlane.xlu0 %137 }
 0x105   :  { %529 = vperm.xlu1 %1317, %v434_v0   ;;  %v1971_v12 = vpop.xlane.xlu0 %140 }
 0x108   :  { %v1337_v0 = vpop.eup %1336 }
 0x109   :  { %532 = vperm.xlu1 %1317, %v435_v5   ;;  %263 = vadd.xlane.f32.xlu0 %v262_v31  ;;  %v265_v5 = vsel %vm51_vm0, %v1337_v0, 0.0 }
 0x10d   :  { %269 = vadd.xlane.f32.xlu0 %v268_v35  ;;  %v1983_v35 = vsub.f32 %v1632_v20, %v1887_v9  ;;  %v2001_v20 = vsub.f32 %v1646_v24, %v1892_v47  ;;  %v204_v9 = vmul.f32 1.442695, %v1990_v21  ;;  %v2019_v47 = vsub.f32 %v1665_v29, %v1918_v11 }
 0x10f   :  { %v206_v24 = vmul.f32 1.442695, %v2001_v20  ;;  %v208_v11 = vmul.f32 1.442695, %v2019_v47 }
 0x111   :  { %272 = vadd.xlane.f32.xlu0 %v271_v42 }
 0x129   :  { %v1969_v23 = vpop.xlane.xlu1 %245 }
 0x12a   :  { %3008 = vst [vmem:[#allocation6_spill] sm:$0xff] %v1969_v23  ;;  %v202_v23 = vmul.f32 1.442695, %v1983_v35 }
 0x12c   :  { %1340 = vpow2.f32 %v202_v23 }
 0x12d   :  { %v1977_v31 = vpop.xlane.xlu1 %251  ;;  %266 = vadd.xlane.f32.xlu1 %v265_v5  ;;  %v1979_v34 = vpop.xlane.xlu0 %248  ;;  %v1997_v5 = vand.u32 127, %v3007_v13  ;;  %1342 = vpow2.f32 %v204_v9 }
 0x12e   :  { %1344 = vpow2.f32 %v206_v24 }
 0x12f   :  { %1346 = vpow2.f32 %v208_v11 }
 0x131   :  { %v1986_v42 = vpop.xlane.xlu1 %257  ;;  %v1992_v50 = vpop.xlane.xlu0 %254 }
 0x132   :  { %3009 = vst [vmem:[#allocation7_spill] sm:$0xff] %v1986_v42 }
 0x135   :  { %v1994_v0 = vpop.xlane.xlu1 %260 }
 0x139   :  { %v2004_v42 = vpop.permute.xlu1 %439  ;;  %v2006_v8 = vpop.permute.xlu0 %442 }
 0x13a   :  { %vm534_vm1 = vcmp.eq.s32.totalorder %v1997_v5, %v2004_v42  ;;  %vm535_vm2 = vcmp.eq.s32.totalorder %v1997_v5, %v2006_v8 }
 0x13b   :  { %v566_v25 = vsel %vm534_vm1, %v1784_v7, 0.0  ;;  %v567_v13 = vsel %vm535_vm2, %v1792_v19, 0.0  ;;  %v2032_v7 = vsub.f32 %v1660_v28, %v1907_v60  ;;  %v1339_v19 = vpop.eup %1338  ;;  %v2052_v60 = vsub.f32 %v1679_v33, %v1929_v16 }
 0x13c   :  { %v598_v63 = vsel %vm51_vm0, %v566_v25, 0.0  ;;  %v601_v25 = vsel %vm51_vm0, %v567_v13, 0.0  ;;  %v274_v24 = vsel %vm51_vm0, %v1339_v19, 0.0 }
 0x13d   :  { %v2022_v23 = vpop.permute.xlu1 %445  ;;  %599 = vadd.xlane.f32.xlu0 %v598_v63  ;;  %v210_v28 = vmul.f32 1.442695, %v2032_v7  ;;  %v212_v16 = vmul.f32 1.442695, %v2052_v60 }
 0x13e   :  { %vm536_vm3 = vcmp.eq.s32.totalorder %v1997_v5, %v2022_v23 }
 0x13f   :  { %v568_v29 = vsel %vm536_vm3, %v1787_v10, 0.0  ;;  %1348 = vpow2.f32 %v210_v28 }
 0x140   :  { %v604_v9 = vsel %vm51_vm0, %v568_v29, 0.0  ;;  %v1341_v29 = vpop.eup %1340  ;;  %1350 = vpow2.f32 %v212_v16 }
 0x141   :  { %605 = vadd.xlane.f32.xlu1 %v604_v9  ;;  %v2041_v63 = vpop.permute.xlu1 %448  ;;  %602 = vadd.xlane.f32.xlu0 %v601_v25  ;;  %v277_v25 = vsel %vm51_vm0, %v1341_v29, 0.0  ;;  %v1343_v19 = vpop.eup %1342 }
 0x142   :  { %vm537_vm4 = vcmp.eq.s32.totalorder %v1997_v5, %v2041_v63 }
 0x143   :  { %v569_v10 = vsel %vm537_vm4, %v1795_v22, 0.0  ;;  %v2062_v22 = vsub.f32 %v1674_v32, %v1916_v6  ;;  %v2082_v6 = vsub.f32 %v1693_v37, %v1936_v26 }
 0x144   :  { %v607_v13 = vsel %vm51_vm0, %v569_v10, 0.0 }
 0x145   :  { %608 = vadd.xlane.f32.xlu1 %v607_v13  ;;  %v2056_v9 = vpop.permute.xlu1 %451  ;;  %275 = vadd.xlane.f32.xlu0 %v274_v24  ;;  %v214_v32 = vmul.f32 1.442695, %v2062_v22  ;;  %v280_v13 = vsel %vm51_vm0, %v1343_v19, 0.0  ;;  %v1345_v24 = vpop.eup %1344  ;;  %v216_v26 = vmul.f32 1.442695, %v2082_v6 }
 0x146   :  { %vm538_vm5 = vcmp.eq.s32.totalorder %v1997_v5, %v2056_v9  ;;  %v283_v16 = vsel %vm51_vm0, %v1345_v24, 0.0 }
 0x147   :  { %v570_v33 = vsel %vm538_vm5, %v1800_v27, 0.0  ;;  %1352 = vpow2.f32 %v214_v32 }
 0x148   :  { %v610_v11 = vsel %vm51_vm0, %v570_v33, 0.0  ;;  %1354 = vpow2.f32 %v216_v26  ;;  %v2133_v26 = vsub.f32 %v1702_v40, %v1934_v1 }
 0x149   :  { %611 = vadd.xlane.f32.xlu1 %v610_v11  ;;  %v2071_v10 = vpop.permute.xlu1 %454  ;;  %278 = vadd.xlane.f32.xlu0 %v277_v25  ;;  %v1347_v11 = vpop.eup %1346 }
 0x14a   :  { %vm539_vm6 = vcmp.eq.s32.totalorder %v1997_v5, %v2071_v10  ;;  %v286_v32 = vsel %vm51_vm0, %v1347_v11, 0.0  ;;  %v222_v40 = vmul.f32 1.442695, %v2133_v26 }
 0x14b   :  { %v571_v27 = vsel %vm539_vm6, %v1803_v30, 0.0  ;;  %v2092_v30 = vsub.f32 %v1688_v36, %v1927_v18  ;;  %v2112_v18 = vsub.f32 %v1707_v41, %v1945_v39 }
 0x14c   :  { %v613_v28 = vsel %vm51_vm0, %v571_v27, 0.0  ;;  %v1349_v27 = vpop.eup %1348 }
 0x14d   :  { %614 = vadd.xlane.f32.xlu1 %v613_v28  ;;  %v2086_v29 = vpop.permute.xlu1 %457  ;;  %281 = vadd.xlane.f32.xlu0 %v280_v13  ;;  %v218_v36 = vmul.f32 1.442695, %v2092_v30  ;;  %v220_v41 = vmul.f32 1.442695, %v2112_v18  ;;  %v289_v13 = vsel %vm51_vm0, %v1349_v27, 0.0  ;;  %v1351_v24 = vpop.eup %1350 }
 0x14e   :  { %vm540_vm7 = vcmp.eq.s32.totalorder %v1997_v5, %v2086_v29 }
 0x14f   :  { %v572_v37 = vsel %vm540_vm7, %v1898_v52, 0.0  ;;  %1356 = vpow2.f32 %v218_v36  ;;  %v292_v36 = vsel %vm51_vm0, %v1351_v24, 0.0 }
 0x150   :  { %v616_v33 = vsel %vm51_vm0, %v572_v37, 0.0  ;;  %1358 = vpow2.f32 %v220_v41 }
 0x151   :  { %v2101_v25 = vpop.permute.xlu1 %460  ;;  %617 = vadd.xlane.f32.xlu1 %v616_v33  ;;  %284 = vadd.xlane.f32.xlu0 %v283_v16  ;;  %v2143_v16 = vsub.f32 %v1721_v45, %v1950_v46  ;;  %1360 = vpow2.f32 %v222_v40 }
 0x152   :  { %vm541_vm8 = vcmp.eq.s32.totalorder %v1997_v5, %v2101_v25 }
 0x153   :  { %v573_v52 = vsel %vm541_vm8, %v1954_v51, 0.0 }
 0x154   :  { %v619_v19 = vsel %vm51_vm0, %v573_v52, 0.0  ;;  %v1353_v52 = vpop.eup %1352 }
 0x155   :  { %v2116_v28 = vpop.permute.xlu1 %463  ;;  %620 = vadd.xlane.f32.xlu1 %v619_v19  ;;  %287 = vadd.xlane.f32.xlu0 %v286_v32  ;;  %v295_v46 = vsel %vm51_vm0, %v1353_v52, 0.0  ;;  %v1355_v32 = vpop.eup %1354 }
 0x156   :  { %vm542_vm9 = vcmp.eq.s32.totalorder %v1997_v5, %v2116_v28 }
 0x157   :  { %v574_v51 = vsel %vm542_vm9, %v1905_v59, 0.0  ;;  %v2135_v59 = vpop.permute.xlu0 %472 }
 0x158   :  { %v622_v39 = vsel %vm51_vm0, %v574_v51, 0.0  ;;  %vm545_vm11 = vcmp.eq.s32.totalorder %v1997_v5, %v2135_v59 }
 0x159   :  { %v2127_v37 = vpop.permute.xlu1 %466  ;;  %623 = vadd.xlane.f32.xlu1 %v622_v39  ;;  %290 = vadd.xlane.f32.xlu0 %v289_v13  ;;  %v577_v51 = vsel %vm545_vm11, %v1983_v35, 0.0  ;;  %v2177_v35 = vsub.f32 %v1716_v44, %v1943_v38 }
 0x15a   :  { %vm543_vm10 = vcmp.eq.s32.totalorder %v1997_v5, %v2127_v37  ;;  %v631_v41 = vsel %vm51_vm0, %v577_v51, 0.0 }
 0x15b   :  { %v575_v33 = vsel %vm543_vm10, %v1914_v4, 0.0  ;;  %v224_v4 = vmul.f32 1.442695, %v2143_v16  ;;  %v2179_v24 = vpop.permute.xlu0 %478 }
 0x15c   :  { %v625_v11 = vsel %vm51_vm0, %v575_v33, 0.0  ;;  %v1357_v39 = vpop.eup %1356  ;;  %v2183_v33 = vsub.f32 %v1735_v49, %v1958_v56  ;;  %vm547_vm14 = vcmp.eq.s32.totalorder %v1997_v5, %v2179_v24  ;;  %v226_v49 = vmul.f32 1.442695, %v2177_v35 }
 0x15d   :  { %v2147_v19 = vpop.permute.xlu1 %469  ;;  %626 = vadd.xlane.f32.xlu1 %v625_v11  ;;  %293 = vadd.xlane.f32.xlu0 %v292_v36  ;;  %1362 = vpow2.f32 %v224_v4  ;;  %v2188_v11 = vld [vmem:[%s3005_s3] ss:$0 sm:$0xff]  ;;  %v301_v36 = vsel %vm51_vm0, %v1357_v39, 0.0  ;;  %v579_v4 = vsel %vm547_vm14, %v2001_v20, 0.0 }
 0x15e   :  { %vm544_vm12 = vcmp.eq.s32.totalorder %v1997_v5, %v2147_v19  ;;  %v734_v44 = vsel %vm535_vm2, %v2188_v11, 0.0  ;;  %v228_v38 = vmul.f32 1.442695, %v2183_v33  ;;  %v733_v8 = vsel %vm534_vm1, %v2188_v11, 0.0 }
 0x15f   :  { %v576_v45 = vsel %vm544_vm12, %v1974_v2, 0.0  ;;  %v298_v2 = vsel %vm51_vm0, %v1355_v32, 0.0  ;;  %v768_v40 = vsel %vm51_vm0, %v734_v44, 0.0  ;;  %1364 = vpow2.f32 %v226_v49 }
 0x160   :  { %v628_v1 = vsel %vm51_vm0, %v576_v45, 0.0  ;;  %v2202_v45 = vpop.permute.xlu0 %481  ;;  %1366 = vpow2.f32 %v228_v38  ;;  %v637_v32 = vsel %vm51_vm0, %v579_v4, 0.0  ;;  %v2254_v38 = vsub.f32 %v1744_v53, %v1956_v55 }
 0x161   :  { %v2161_v27 = vpop.permute.xlu1 %475  ;;  %629 = vadd.xlane.f32.xlu1 %v628_v1  ;;  %296 = vadd.xlane.f32.xlu0 %v295_v46  ;;  %v765_v46 = vsel %vm51_vm0, %v733_v8, 0.0  ;;  %vm548_vm15 = vcmp.eq.s32.totalorder %v1997_v5, %v2202_v45  ;;  %v737_v53 = vsel %vm538_vm5, %v2188_v11, 0.0  ;;  %v738_v55 = vsel %vm539_vm6, %v2188_v11, 0.0 }
 0x162   :  { %vm546_vm13 = vcmp.eq.s32.totalorder %v1997_v5, %v2161_v27  ;;  %v580_v63 = vsel %vm548_vm15, %v2019_v47, 0.0  ;;  %v777_v4 = vsel %vm51_vm0, %v737_v53, 0.0  ;;  %v780_v9 = vsel %vm51_vm0, %v738_v55, 0.0 }
 0x163   :  { %v578_v13 = vsel %vm546_vm13, %v1990_v21, 0.0  ;;  %v1359_v21 = vpop.eup %1358  ;;  %v746_v27 = vsel %vm547_vm14, %v2188_v11, 0.0 }
 0x164   :  { %v634_v52 = vsel %vm51_vm0, %v578_v13, 0.0  ;;  %v304_v56 = vsel %vm51_vm0, %v1359_v21, 0.0  ;;  %v1361_v1 = vpop.eup %1360  ;;  %v2218_v42 = vpop.permute.xlu0 %484  ;;  %v735_v13 = vsel %vm536_vm3, %v2188_v11, 0.0  ;;  %v640_v21 = vsel %vm51_vm0, %v580_v63, 0.0 }
 0x165   :  { %299 = vadd.xlane.f32.xlu0 %v298_v2  ;;  %632 = vadd.xlane.f32.xlu1 %v631_v41  ;;  %v2216_v2 = vsub.f32 %v1730_v48, %v1948_v43  ;;  %v2222_v41 = vsub.f32 %v1749_v54, %v1963_v17  ;;  %v307_v20 = vsel %vm51_vm0, %v1361_v1, 0.0  ;;  %v736_v48 = vsel %vm537_vm4, %v2188_v11, 0.0 }
 0x166   :  { %vm549_vm1 = vcmp.eq.s32.totalorder %v1997_v5, %v2218_v42  ;;  %v771_v17 = vsel %vm51_vm0, %v735_v13, 0.0  ;;  %v774_v23 = vsel %vm51_vm0, %v736_v48, 0.0 }
 0x167   :  { %v230_v54 = vmul.f32 1.442695, %v2216_v2  ;;  %v232_v43 = vmul.f32 1.442695, %v2222_v41  ;;  %v748_v45 = vsel %vm549_vm1, %v2188_v11, 0.0 }
 0x168   :  { %v2256_v47 = vpop.permute.xlu0 %490 }
 0x169   :  { %302 = vadd.xlane.f32.xlu0 %v301_v36  ;;  %635 = vadd.xlane.f32.xlu1 %v634_v52  ;;  %v581_v36 = vsel %vm549_vm1, %v2032_v7, 0.0  ;;  %1368 = vpow2.f32 %v230_v54  ;;  %v2262_v7 = vsub.f32 %v1763_v58, %v1967_v15  ;;  %vm551_vm2 = vcmp.eq.s32.totalorder %v1997_v5, %v2256_v47 }
 0x16a   :  { %v1363_v51 = vpop.eup %1362  ;;  %1370 = vpow2.f32 %v232_v43  ;;  %v643_v44 = vsel %vm51_vm0, %v581_v36, 0.0  ;;  %v234_v58 = vmul.f32 1.442695, %v2254_v38  ;;  %v583_v1 = vsel %vm551_vm2, %v2062_v22, 0.0 }
 0x16b   :  { %v310_v39 = vsel %vm51_vm0, %v1363_v51, 0.0  ;;  %v236_v15 = vmul.f32 1.442695, %v2262_v7  ;;  %v649_v51 = vsel %vm51_vm0, %v583_v1, 0.0  ;;  %v2302_v22 = vsub.f32 %v1777_v62, %v1971_v12 }
 0x16c   :  { %v1365_v52 = vpop.eup %1364  ;;  %1372 = vpow2.f32 %v234_v58 }
 0x16d   :  { %305 = vadd.xlane.f32.xlu0 %v304_v56  ;;  %769 = vadd.xlane.f32.xlu1 %v768_v40  ;;  %v1367_v49 = vpop.eup %1366  ;;  %v2258_v56 = vpop.permute.xlu1 %487  ;;  %v313_v40 = vsel %vm51_vm0, %v1365_v52, 0.0  ;;  %1374 = vpow2.f32 %v236_v15  ;;  %v238_v12 = vmul.f32 1.442695, %v2302_v22 }
 0x16e   :  { %v316_v8 = vsel %vm51_vm0, %v1367_v49, 0.0  ;;  %vm550_vm3 = vcmp.eq.s32.totalorder %v1997_v5, %v2258_v56  ;;  %v750_v56 = vsel %vm551_vm2, %v2188_v11, 0.0 }
 0x16f   :  { %v582_v10 = vsel %vm550_vm3, %v2052_v60, 0.0  ;;  %v2296_v60 = vpop.permute.xlu0 %496  ;;  %v749_v42 = vsel %vm550_vm3, %v2188_v11, 0.0 }
 0x170   :  { %vm553_vm4 = vcmp.eq.s32.totalorder %v1997_v5, %v2296_v60 }
 0x171   :  { %766 = vadd.xlane.f32.xlu0 %v765_v46  ;;  %638 = vadd.xlane.f32.xlu1 %v637_v32  ;;  %v646_v32 = vsel %vm51_vm0, %v582_v10, 0.0  ;;  %v2298_v13 = vpop.permute.xlu1 %493 }
 0x172   :  { %vm552_vm5 = vcmp.eq.s32.totalorder %v1997_v5, %v2298_v13 }
 0x173   :  { %v584_v25 = vsel %vm552_vm5, %v2082_v6, 0.0  ;;  %v2338_v6 = vsub.f32 %v1772_v61, %v1965_v14  ;;  %v751_v47 = vsel %vm552_vm5, %v2188_v11, 0.0 }
 0x174   :  { %v652_v63 = vsel %vm51_vm0, %v584_v25, 0.0 }
 0x175   :  { %308 = vadd.xlane.f32.xlu0 %v307_v20  ;;  %311 = vadd.xlane.f32.xlu1 %v310_v39  ;;  %v2294_v39 = vsub.f32 %v1758_v57, %v1961_v3  ;;  %v739_v57 = vsel %vm540_vm7, %v2188_v11, 0.0  ;;  %v740_v3 = vsel %vm541_vm8, %v2188_v11, 0.0  ;;  %v242_v61 = vmul.f32 1.442695, %v2338_v6 }
 0x176   :  { %v1369_v46 = vpop.eup %1368  ;;  %v783_v43 = vsel %vm51_vm0, %v739_v57, 0.0  ;;  %v786_v29 = vsel %vm51_vm0, %v740_v3, 0.0 }
 0x177   :  { %v1371_v20 = vpop.eup %1370  ;;  %v319_v48 = vsel %vm51_vm0, %v1369_v46, 0.0  ;;  %v240_v62 = vmul.f32 1.442695, %v2294_v39  ;;  %v744_v46 = vsel %vm545_vm11, %v2188_v11, 0.0 }
 0x178   :  { %v322_v54 = vsel %vm51_vm0, %v1371_v20, 0.0  ;;  %v798_v19 = vsel %vm51_vm0, %v744_v46, 0.0 }
 0x179   :  { %772 = vadd.xlane.f32.xlu0 %v771_v17  ;;  %775 = vadd.xlane.f32.xlu1 %v774_v23  ;;  %v585_v17 = vsel %vm553_vm4, %v2092_v30, 0.0  ;;  %1376 = vpow2.f32 %v240_v62  ;;  %v1373_v23 = vpop.eup %1372 }
 0x17a   :  { %1378 = vpow2.f32 %v238_v12  ;;  %v655_v36 = vsel %vm51_vm0, %v585_v17, 0.0  ;;  %v1375_v52 = vpop.eup %1374  ;;  %v325_v30 = vsel %vm51_vm0, %v1373_v23, 0.0 }
 0x17b   :  { %v328_v49 = vsel %vm51_vm0, %v1375_v52, 0.0  ;;  %1380 = vpow2.f32 %v242_v61  ;;  %v804_v52 = vsel %vm51_vm0, %v746_v27, 0.0 }
 0x17c   :  { %1382 = vlog2.f32 %v1979_v34  ;;  %v816_v34 = vsel %vm51_vm0, %v750_v56, 0.0 }
 0x17d   :  { %641 = vadd.xlane.f32.xlu0 %v640_v21  ;;  %644 = vadd.xlane.f32.xlu1 %v643_v44  ;;  %v2332_v21 = vpop.permute.xlu0 %502  ;;  %v2334_v44 = vpop.permute.xlu1 %499 }
 0x17e   :  { %vm555_vm6 = vcmp.eq.s32.totalorder %v1997_v5, %v2332_v21  ;;  %vm554_vm7 = vcmp.eq.s32.totalorder %v1997_v5, %v2334_v44 }
 0x17f   :  { %v586_v28 = vsel %vm554_vm7, %v2112_v18, 0.0  ;;  %v587_v37 = vsel %vm555_vm6, %v2133_v26, 0.0  ;;  %v743_v26 = vsel %vm544_vm12, %v2188_v11, 0.0  ;;  %v754_v13 = vsel %vm555_vm6, %v2188_v11, 0.0 }
 0x180   :  { %v658_v15 = vsel %vm51_vm0, %v586_v28, 0.0  ;;  %v795_v20 = vsel %vm51_vm0, %v743_v26, 0.0  ;;  %v753_v60 = vsel %vm554_vm7, %v2188_v11, 0.0 }
 0x181   :  { %314 = vadd.xlane.f32.xlu0 %v313_v40  ;;  %317 = vadd.xlane.f32.xlu1 %v316_v8  ;;  %v741_v40 = vsel %vm542_vm9, %v2188_v11, 0.0  ;;  %v742_v8 = vsel %vm543_vm10, %v2188_v11, 0.0  ;;  %v2365_v58 = vpop.permute.xlu0 %508  ;;  %v2369_v10 = vpop.permute.xlu1 %505 }
 0x182   :  { %v789_v14 = vsel %vm51_vm0, %v741_v40, 0.0  ;;  %v792_v53 = vsel %vm51_vm0, %v742_v8, 0.0  ;;  %vm557_vm8 = vcmp.eq.s32.totalorder %v1997_v5, %v2365_v58  ;;  %vm556_vm9 = vcmp.eq.s32.totalorder %v1997_v5, %v2369_v10 }
 0x183   :  { %v588_v59 = vsel %vm556_vm9, %v2143_v16, 0.0  ;;  %v756_v21 = vsel %vm557_vm8, %v2188_v11, 0.0  ;;  %v755_v44 = vsel %vm556_vm9, %v2188_v11, 0.0 }
 0x184   :  { %v664_v57 = vsel %vm51_vm0, %v588_v59, 0.0 }
 0x185   :  { %778 = vadd.xlane.f32.xlu0 %v777_v4  ;;  %781 = vadd.xlane.f32.xlu1 %v780_v9  ;;  %v661_v4 = vsel %vm51_vm0, %v587_v37, 0.0 }
 0x186   :  { %v1377_v55 = vpop.eup %1376 }
 0x187   :  { %v1379_v9 = vpop.eup %1378  ;;  %v334_v1 = vsel %vm51_vm0, %v1377_v55, 0.0  ;;  %v813_v55 = vsel %vm51_vm0, %v749_v42, 0.0 }
 0x188   :  { %v331_v18 = vsel %vm51_vm0, %v1379_v9, 0.0  ;;  %v1381_v62 = vpop.eup %1380 }
 0x189   :  { %647 = vadd.xlane.f32.xlu0 %v646_v32  ;;  %650 = vadd.xlane.f32.xlu1 %v649_v51  ;;  %v2383_v32 = vpop.permute.xlu0 %514  ;;  %v2387_v51 = vpop.permute.xlu1 %511  ;;  %v337_v12 = vsel %vm51_vm0, %v1381_v62, 0.0 }
 0x18a   :  { %vm558_vm10 = vcmp.eq.s32.totalorder %v1997_v5, %v2387_v51  ;;  %vm559_vm11 = vcmp.eq.s32.totalorder %v1997_v5, %v2383_v32 }
 0x18b   :  { %v590_v16 = vsel %vm558_vm10, %v2183_v33, 0.0  ;;  %v591_v33 = vsel %vm559_vm11, %v2216_v2, 0.0  ;;  %v758_v58 = vsel %vm559_vm11, %v2188_v11, 0.0 }
 0x18c   :  { %v673_v23 = vsel %vm51_vm0, %v591_v33, 0.0  ;;  %v840_v10 = vsel %vm51_vm0, %v758_v58, 0.0 }
 0x18d   :  { %320 = vadd.xlane.f32.xlu0 %v319_v48  ;;  %323 = vadd.xlane.f32.xlu1 %v322_v54  ;;  %v589_v48 = vsel %vm557_vm8, %v2177_v35, 0.0  ;;  %v2401_v54 = vpop.permute.xlu0 %517  ;;  %v2411_v35 = vpop.permute.xlu1 %520 }
 0x18e   :  { %v667_v3 = vsel %vm51_vm0, %v589_v48, 0.0  ;;  %vm560_vm12 = vcmp.eq.s32.totalorder %v1997_v5, %v2401_v54 }
 0x18f   :  { %v592_v2 = vsel %vm560_vm12, %v2222_v41, 0.0  ;;  %v747_v41 = vsel %vm548_vm15, %v2188_v11, 0.0 }
 0x190   :  { %v807_v8 = vsel %vm51_vm0, %v747_v41, 0.0 }
 0x191   :  { %784 = vadd.xlane.f32.xlu0 %v783_v43  ;;  %787 = vadd.xlane.f32.xlu1 %v786_v29  ;;  %v670_v43 = vsel %vm51_vm0, %v590_v16, 0.0  ;;  %v745_v29 = vsel %vm546_vm13, %v2188_v11, 0.0  ;;  %v2425_v25 = vpop.permute.xlu0 %526  ;;  %vm561_vm13 = vcmp.eq.s32.totalorder %v1997_v5, %v2411_v35  ;;  %v825_v16 = vsel %vm51_vm0, %v753_v60, 0.0 }
 0x192   :  { %v801_v17 = vsel %vm51_vm0, %v745_v29, 0.0  ;;  %v593_v24 = vsel %vm561_vm13, %v2254_v38, 0.0  ;;  %vm563_vm15 = vcmp.eq.s32.totalorder %v1997_v5, %v2425_v25  ;;  %v760_v32 = vsel %vm561_vm13, %v2188_v11, 0.0 }
 0x193   :  { %v679_v61 = vsel %vm51_vm0, %v593_v24, 0.0  ;;  %v595_v28 = vsel %vm563_vm15, %v2302_v22, 0.0 }
 0x195   :  { %653 = vadd.xlane.f32.xlu0 %v652_v63  ;;  %656 = vadd.xlane.f32.xlu1 %v655_v36  ;;  %v2439_v63 = vpop.permute.xlu1 %523  ;;  %v264_v36 = vpop.xlane.xlu0 %263 }
 0x196   :  { %vm562_vm14 = vcmp.eq.s32.totalorder %v1997_v5, %v2439_v63 }
 0x197   :  { %v594_v38 = vsel %vm562_vm14, %v2262_v7, 0.0  ;;  %v761_v54 = vsel %vm562_vm14, %v2188_v11, 0.0 }
 0x199   :  { %326 = vadd.xlane.f32.xlu0 %v325_v30  ;;  %329 = vadd.xlane.f32.xlu1 %v328_v49  ;;  %v676_v30 = vsel %vm51_vm0, %v592_v2, 0.0  ;;  %v2453_v49 = vpop.permute.xlu1 %529  ;;  %v270_v40 = vpop.xlane.xlu0 %269 }
 0x19a   :  { %vm564_vm1 = vcmp.eq.s32.totalorder %v1997_v5, %v2453_v49 }
 0x19b   :  { %v596_v22 = vsel %vm564_vm1, %v2294_v39, 0.0 }
 0x19d   :  { %790 = vadd.xlane.f32.xlu0 %v789_v14  ;;  %793 = vadd.xlane.f32.xlu1 %v792_v53  ;;  %v810_v14 = vsel %vm51_vm0, %v748_v45, 0.0  ;;  %v682_v53 = vsel %vm51_vm0, %v594_v38, 0.0  ;;  %v2479_v7 = vpop.permute.xlu1 %532  ;;  %v273_v37 = vpop.xlane.xlu0 %272 }
 0x19e   :  { %vm565_vm3 = vcmp.eq.s32.totalorder %v1997_v5, %v2479_v7  ;;  %v849_v7 = vsel %vm51_vm0, %v761_v54, 0.0 }
 0x19f   :  { %v597_v39 = vsel %vm565_vm3, %v2338_v6, 0.0  ;;  %v752_v6 = vsel %vm553_vm4, %v2188_v11, 0.0  ;;  %vm1218_vm4 = vcmask 7168  }
 0x1a1   :  { %659 = vadd.xlane.f32.xlu0 %v658_v15  ;;  %662 = vadd.xlane.f32.xlu1 %v661_v4  ;;  %v685_v15 = vsel %vm51_vm0, %v595_v28, 0.0  ;;  %v762_v28 = vsel %vm563_vm15, %v2188_v11, 0.0 }
 0x1a5   :  { %332 = vadd.xlane.f32.xlu0 %v331_v18  ;;  %335 = vadd.xlane.f32.xlu1 %v334_v1  ;;  %v3010_v18 = vld [vmem:[#allocation6_spill] sm:$0xff]  ;;  %v688_v1 = vsel %vm51_vm0, %v596_v22, 0.0 }
 0x1a6   :  { %1384 = vlog2.f32 %v3010_v18  ;;  %v852_v18 = vsel %vm51_vm0, %v762_v28, 0.0 }
 0x1a7   :  { %1386 = vlog2.f32 %v264_v36  ;;  %v831_v36 = vsel %vm51_vm0, %v755_v44, 0.0 }
 0x1a9   :  { %796 = vadd.xlane.f32.xlu0 %v795_v20  ;;  %799 = vadd.xlane.f32.xlu1 %v798_v19  ;;  %v819_v20 = vsel %vm51_vm0, %v751_v47, 0.0  ;;  %v691_v19 = vsel %vm51_vm0, %v597_v39, 0.0 }
 0x1ad   :  { %665 = vadd.xlane.f32.xlu0 %v664_v57  ;;  %668 = vadd.xlane.f32.xlu1 %v667_v3  ;;  %v822_v57 = vsel %vm51_vm0, %v752_v6, 0.0  ;;  %v828_v3 = vsel %vm51_vm0, %v754_v13, 0.0  ;;  %v763_v13 = vsel %vm564_vm1, %v2188_v11, 0.0 }
 0x1b1   :  { %338 = vadd.xlane.f32.xlu0 %v337_v12  ;;  %671 = vadd.xlane.f32.xlu1 %v670_v43  ;;  %v834_v12 = vsel %vm51_vm0, %v756_v21, 0.0 }
 0x1b5   :  { %802 = vadd.xlane.f32.xlu0 %v801_v17  ;;  %674 = vadd.xlane.f32.xlu1 %v673_v23 }
 0x1b6   :  { %v267_v4 = vpop.xlane.xlu1 %266 }
 0x1b7   :  { %1388 = vlog2.f32 %v267_v4 }
 0x1b8   :  { %1390 = vlog2.f32 %v1977_v31  ;;  %v1383_v31 = vpop.eup %1382 }
 0x1b9   :  { %805 = vadd.xlane.f32.xlu0 %v804_v52  ;;  %677 = vadd.xlane.f32.xlu1 %v676_v30  ;;  %1392 = vlog2.f32 %v1992_v50  ;;  %v1385_v43 = vpop.eup %1384  ;;  %v343_v29 = vmul.f32 0.6931472, %v1383_v31  ;;  %v757_v52 = vsel %vm558_vm10, %v2188_v11, 0.0 }
 0x1ba   :  { %1394 = vlog2.f32 %v270_v40  ;;  %v1387_v33 = vpop.eup %1386  ;;  %v341_v2 = vmul.f32 0.6931472, %v1385_v43  ;;  %v837_v35 = vsel %vm51_vm0, %v757_v52, 0.0 }
 0x1bb   :  { %1396 = vlog2.f32 %v273_v37  ;;  %v353_v30 = vmul.f32 0.6931472, %v1387_v33  ;;  %v759_v37 = vsel %vm560_vm12, %v2188_v11, 0.0 }
 0x1bd   :  { %808 = vadd.xlane.f32.xlu0 %v807_v8  ;;  %680 = vadd.xlane.f32.xlu1 %v679_v61  ;;  %v3011_v8 = vld [vmem:[#allocation7_spill] sm:$0xff] }
 0x1c1   :  { %811 = vadd.xlane.f32.xlu0 %v810_v14  ;;  %683 = vadd.xlane.f32.xlu1 %v682_v53  ;;  %v846_v14 = vsel %vm51_vm0, %v760_v32, 0.0 }
 0x1c4   :  { %v1389_v24 = vpop.eup %1388 }
 0x1c5   :  { %814 = vadd.xlane.f32.xlu0 %v813_v55  ;;  %686 = vadd.xlane.f32.xlu1 %v685_v15  ;;  %v1391_v45 = vpop.eup %1390  ;;  %v355_v42 = vmul.f32 0.6931472, %v1389_v24 }
 0x1c6   :  { %v600_v9 = vpop.xlane.xlu0 %599  ;;  %v1393_v53 = vpop.eup %1392  ;;  %v345_v25 = vmul.f32 0.6931472, %v1391_v45 }
 0x1c7   :  { %v2560_v61 = vsub.f32 %v600_v9, %v341_v2  ;;  %v347_v4 = vmul.f32 0.6931472, %v1393_v53  ;;  %v843_v9 = vsel %vm51_vm0, %v759_v37, 0.0 }
 0x1c9   :  { %817 = vadd.xlane.f32.xlu0 %v816_v34  ;;  %689 = vadd.xlane.f32.xlu1 %v688_v1  ;;  %v893_v22 = vmul.f32 1.442695, %v2560_v61  ;;  %v764_v34 = vsel %vm565_vm3, %v2188_v11, 0.0 }
 0x1ca   :  { %v2505_v26 = vpop.xlane.xlu1 %605  ;;  %v603_v46 = vpop.xlane.xlu0 %602  ;;  %v858_v6 = vsel %vm51_vm0, %v764_v34, 0.0 }
 0x1cb   :  { %v2545_v27 = vsub.f32 %v603_v46, %v343_v29  ;;  %v2592_v47 = vsub.f32 %v2505_v26, %v345_v25 }
 0x1cd   :  { %820 = vadd.xlane.f32.xlu0 %v819_v20  ;;  %692 = vadd.xlane.f32.xlu1 %v691_v19  ;;  %v895_v51 = vmul.f32 1.442695, %v2545_v27 }
 0x1ce   :  { %v2517_v59 = vpop.xlane.xlu1 %608  ;;  %v276_v48 = vpop.xlane.xlu0 %275 }
 0x1cf   :  { %1398 = vlog2.f32 %v276_v48  ;;  %v2597_v63 = vsub.f32 %v2517_v59, %v347_v4 }
 0x1d0   :  { %1400 = vlog2.f32 %v3011_v8 }
 0x1d1   :  { %823 = vadd.xlane.f32.xlu0 %v822_v57  ;;  %829 = vadd.xlane.f32.xlu1 %v828_v3  ;;  %1402 = vlog2.f32 %v1994_v0  ;;  %v1395_v0 = vpop.eup %1394  ;;  %v897_v57 = vmul.f32 1.442695, %v2592_v47  ;;  %v899_v60 = vmul.f32 1.442695, %v2597_v63 }
 0x1d2   :  { %v2531_v62 = vpop.xlane.xlu1 %611  ;;  %v279_v50 = vpop.xlane.xlu0 %278  ;;  %v357_v1 = vmul.f32 0.6931472, %v1395_v0  ;;  %v2641_v0 = vstv %s3002_s0  ;;  %s1533_s0 = smov [#allocation3]  }
 0x1d3   :  { %1404 = vlog2.f32 %v279_v50  ;;  %v1397_v39 = vpop.eup %1396  ;;  %v855_v50 = vsel %vm51_vm0, %v763_v13, 0.0  ;;  %s1303_s12 = sshll.u32 %s1533_s0, 4  ;;  %s1304_s12 = int_to_ptr.vmem [resolvable:$true] %s1303_s12 }
 0x1d4   :  { %1406 = vpow2.f32 %v895_v51  ;;  %v359_v26 = vmul.f32 0.6931472, %v1397_v39  ;;  %v3012_v51 = vlaneseq  ;;  %s1510_s14 = scalar_lea.vmem %s1304_s12, 128  ;;  %p1515_p1 = scmp.lt.s32.totalorder %s1304_s12, %s1304_s12 }
 0x1d5   :  { %826 = vadd.xlane.f32.xlu0 %v825_v16  ;;  %835 = vadd.xlane.f32.xlu1 %v834_v12  ;;  %p1511_p0 = scmp.ne.s32.totalorder %s1304_s12, %s1510_s14  ;;  %p1516_p2 = scmp.lt.s32.totalorder %s1510_s14, %s1510_s14 }
 0x1d6   :  { %v2543_v17 = vpop.xlane.xlu1 %614  ;;  %v282_v23 = vpop.xlane.xlu0 %281  ;;  %v2629_v45 = vshrl.u32 %v3012_v51, 7 }
 0x1d7   :  { %1408 = vlog2.f32 %v282_v23  ;;  %p1517_p3 = por %p1516_p2, %p1515_p1 }
 0x1d8   :  { %1410 = vpow2.f32 %v893_v22  ;;  %v1089_v37 = vadd.s32 8, %v2629_v45  ;;  %vm1154_vm2 = vcmp.lt.s32.totalorder %v2629_v45, %v2641_v0 }
 0x1d9   :  { %832 = vadd.xlane.f32.xlu0 %v831_v36  ;;  %841 = vadd.xlane.f32.xlu1 %v840_v10  ;;  %1412 = vpow2.f32 %v897_v57  ;;  %p1518_p4 = pnand %p1517_p3, %p1511_p0 }
 0x1da   :  { %v618_v41 = vpop.xlane.xlu1 %617  ;;  %v2557_v40 = vpop.xlane.xlu0 %284  ;;  %1414 = vpow2.f32 %v899_v60  ;;  %vm1155_vm0 = vcmp.lt.s32.totalorder %v1089_v37, %v2641_v0 }
 0x1db   :  { %v2563_v38 = vsub.f32 %v618_v41, %v353_v30 }
 0x1dc   :  { %v1399_v48 = vpop.eup %1398 }
 0x1dd   :  { %838 = vadd.xlane.f32.xlu0 %v837_v35  ;;  %847 = vadd.xlane.f32.xlu1 %v846_v14  ;;  %v1401_v31 = vpop.eup %1400  ;;  %v361_v49 = vmul.f32 0.6931472, %v1399_v48  ;;  %v905_v48 = vmul.f32 1.442695, %v2563_v38 }
 0x1de   :  { %v621_v55 = vpop.xlane.xlu1 %620  ;;  %v2576_v15 = vpop.xlane.xlu0 %287  ;;  %v349_v58 = vmul.f32 0.6931472, %v1401_v31 }
 0x1df   :  { %v2579_v56 = vsub.f32 %v621_v55, %v355_v42  ;;  %v1403_v16 = vpop.eup %1402 }
 0x1e0   :  { %v1405_v11 = vpop.eup %1404  ;;  %v351_v33 = vmul.f32 0.6931472, %v1403_v16  ;;  %v2619_v36 = vsub.f32 %v2531_v62, %v349_v58 }
 0x1e1   :  { %844 = vadd.xlane.f32.xlu0 %v843_v9  ;;  %853 = vadd.xlane.f32.xlu1 %v852_v18  ;;  %v1407_v29 = vpop.eup %1406  ;;  %v363_v23 = vmul.f32 0.6931472, %v1405_v11  ;;  %v907_v31 = vmul.f32 1.442695, %v2579_v56  ;;  %v1091_v11 = vadd.s32 24, %v2629_v45 }
 0x1e2   :  { %v624_v46 = vpop.xlane.xlu1 %623  ;;  %v2594_v20 = vpop.xlane.xlu0 %290  ;;  %v2624_v32 = vsub.f32 %v2543_v17, %v351_v33  ;;  %v958_v24 = vsub.f32 1.0, %v1407_v29  ;;  %v901_v35 = vmul.f32 1.442695, %v2619_v36 }
 0x1e3   :  { %v2599_v19 = vsub.f32 %v624_v46, %v357_v1  ;;  %vm1157_vm5 = vcmp.lt.s32.totalorder %v1091_v11, %v2641_v0 }
 0x1e4   :  { %v1409_v2 = vpop.eup %1408  ;;  %v903_v62 = vmul.f32 1.442695, %v2624_v32  ;;  %v990_v42 = vmul.f32 %v958_v24, %v958_v24  ;;  %1416 = vpow2.f32 %v901_v35 }
 0x1e5   :  { %850 = vadd.xlane.f32.xlu0 %v849_v7  ;;  %859 = vadd.xlane.f32.xlu1 %v858_v6  ;;  %v1411_v41 = vpop.eup %1410  ;;  %v365_v8 = vmul.f32 0.6931472, %v1409_v2 }
 0x1e6   :  { %v627_v3 = vpop.xlane.xlu1 %626  ;;  %v2608_v59 = vpop.xlane.xlu0 %293  ;;  %v957_v17 = vsub.f32 1.0, %v1411_v41  ;;  %1418 = vpow2.f32 %v903_v62  ;;  %v1022_v9 = vsub.f32 0.0, %v990_v42 }
 0x1e7   :  { %v2611_v21 = vsub.f32 %v627_v3, %v359_v26  ;;  %v1413_v25 = vpop.eup %1412  ;;  %1420 = vpow2.f32 %v905_v48 }
 0x1e8   :  { %v989_v18 = vmul.f32 %v957_v17, %v957_v17  ;;  %v1415_v54 = vpop.eup %1414  ;;  %v959_v46 = vsub.f32 1.0, %v1413_v25  ;;  %1422 = vpow2.f32 %v907_v31 }
 0x1e9   :  { %856 = vadd.xlane.f32.xlu0 %v855_v50  ;;  %v960_v13 = vsub.f32 1.0, %v1415_v54  ;;  %1424 = vlog2.f32 %v2557_v40 }
 0x1ea   :  { %v630_v12 = vpop.xlane.xlu1 %629  ;;  %v2614_v43 = vpop.xlane.xlu0 %296  ;;  %v1021_v7 = vsub.f32 0.0, %v989_v18  ;;  %v991_v60 = vmul.f32 %v959_v46, %v959_v46 }
 0x1eb   :  { %v2616_v44 = vsub.f32 %v630_v12, %v361_v49  ;;  %v992_v16 = vmul.f32 %v960_v13, %v960_v13  ;;  %v1090_v12 = vadd.s32 16, %v2629_v45 }
 0x1ec   :  { %v1023_v33 = vsub.f32 0.0, %v991_v60 }
 0x1ed   :  { %vm1156_vm6 = vcmp.lt.s32.totalorder %v1090_v12, %v2641_v0 }
 0x1ee   :  { %v633_v10 = vpop.xlane.xlu1 %632  ;;  %v2621_v52 = vpop.xlane.xlu0 %299 }
 0x1ef   :  { %v2626_v30 = vsub.f32 %v633_v10, %v363_v23  ;;  %v1024_v10 = vsub.f32 0.0, %v992_v16 }
 0x1f1   :  { %v1417_v2 = vpop.eup %1416 }
 0x1f2   :  { %v636_v14 = vpop.xlane.xlu1 %635  ;;  %v2632_v53 = vpop.xlane.xlu0 %302  ;;  %v961_v42 = vsub.f32 1.0, %v1417_v2 }
 0x1f3   :  { %v2635_v28 = vsub.f32 %v636_v14, %v365_v8  ;;  %v1419_v8 = vpop.eup %1418 }
 0x1f4   :  { %v993_v54 = vmul.f32 %v961_v42, %v961_v42  ;;  %v1421_v48 = vpop.eup %1420  ;;  %v1094_v42 = vadd.s32 48, %v2629_v45 }
 0x1f5   :  { %v1423_v16 = vpop.eup %1422  ;;  %v963_v12 = vsub.f32 1.0, %v1421_v48 }
 0x1f6   :  { %v770_v55 = vpop.xlane.xlu1 %769  ;;  %v2643_v22 = vpop.xlane.xlu0 %305  ;;  %vm1160_vm10 = vcmp.lt.s32.totalorder %v1094_v42, %v2641_v0 }
 0x1f7   :  { %v862_v4 = vmul.f32 %v770_v55, %v2545_v27  ;;  %v962_v55 = vsub.f32 1.0, %v1419_v8  ;;  %v915_v8 = vmul.f32 1.442695, %v2626_v30 }
 0x1f9   :  { %v1054_v34 = vmul.f32 %v1022_v9, %v862_v4 }
 0x1fa   :  { %v2647_v1 = vpop.xlane.xlu1 %638  ;;  %v767_v39 = vpop.xlane.xlu0 %766 }
 0x1fb   :  { %v861_v6 = vmul.f32 %v767_v39, %v2560_v61  ;;  %v1187_v26 = vsel %vm1155_vm0, %v1054_v34, 0.0  ;;  %v911_v34 = vmul.f32 1.442695, %v2611_v21  ;;  %v994_v39 = vmul.f32 %v962_v55, %v962_v55 }
 0x1fc   :  { %v1220_v61 = vsel %vm1218_vm4, %v1187_v26, 0.0  ;;  %v1025_v26 = vsub.f32 0.0, %v993_v54 }
 0x1fd   :  { %v1053_v27 = vmul.f32 %v1021_v7, %v861_v6  ;;  %v1093_v7 = vadd.s32 40, %v2629_v45  ;;  %v1092_v6 = vadd.s32 32, %v2629_v45  ;;  %v1026_v60 = vsub.f32 0.0, %v994_v39 }
 0x1fe   :  { %v2653_v57 = vpop.xlane.xlu1 %311  ;;  %v2655_v3 = vpop.xlane.xlu0 %308 }
 0x1ff   :  { %v1186_v50 = vsel %vm1154_vm2, %v1053_v27, 0.0  ;;  %vm1159_vm7 = vcmp.lt.s32.totalorder %v1093_v7, %v2641_v0  ;;  %vm1158_vm8 = vcmp.lt.s32.totalorder %v1092_v6, %v2641_v0 }
 0x200   :  { %v1219_v49 = vsel %vm1218_vm4, %v1186_v50, 0.0 }
 0x201   :  { %v1221_v29 = vadd.f32 %v1220_v61, %v1219_v49 }
 0x202   :  { %v776_v58 = vpop.xlane.xlu1 %775  ;;  %v773_v23 = vpop.xlane.xlu0 %772 }
 0x203   :  { %v864_v24 = vmul.f32 %v776_v58, %v2597_v63  ;;  %v863_v41 = vmul.f32 %v773_v23, %v2592_v47  ;;  %v909_v47 = vmul.f32 1.442695, %v2599_v19  ;;  %v913_v23 = vmul.f32 1.442695, %v2616_v44 }
 0x205   :  { %v1056_v51 = vmul.f32 %v1024_v10, %v864_v24  ;;  %v1055_v35 = vmul.f32 %v1023_v33, %v863_v41  ;;  %1426 = vpow2.f32 %v909_v47  ;;  %v964_v33 = vsub.f32 1.0, %v1423_v16 }
 0x206   :  { %v2666_v14 = vpop.xlane.xlu1 %644  ;;  %v2668_v62 = vpop.xlane.xlu0 %641  ;;  %1428 = vpow2.f32 %v911_v34  ;;  %v995_v41 = vmul.f32 %v963_v12, %v963_v12 }
 0x207   :  { %v1189_v17 = vsel %vm1157_vm5, %v1056_v51, 0.0  ;;  %v1188_v37 = vsel %vm1156_vm6, %v1055_v35, 0.0  ;;  %1430 = vlog2.f32 %v2594_v20  ;;  %v996_v20 = vmul.f32 %v964_v33, %v964_v33 }
 0x208   :  { %v1222_v25 = vsel %vm1218_vm4, %v1188_v37, 0.0  ;;  %v1224_v4 = vsel %vm1218_vm4, %v1189_v17, 0.0  ;;  %1432 = vlog2.f32 %v2576_v15  ;;  %v1095_v35 = vadd.s32 56, %v2629_v45  ;;  %v1425_v15 = vpop.eup %1424 }
 0x209   :  { %v1223_v63 = vadd.f32 %v1222_v25, %v1221_v29  ;;  %1434 = vlog2.f32 %v2608_v59  ;;  %v1027_v37 = vsub.f32 0.0, %v995_v41  ;;  %v367_v6 = vmul.f32 0.6931472, %v1425_v15 }
 0x20a   :  { %v2673_v9 = vpop.xlane.xlu1 %317  ;;  %v2675_v18 = vpop.xlane.xlu0 %314  ;;  %1436 = vpow2.f32 %v913_v23  ;;  %vm1161_vm9 = vcmp.lt.s32.totalorder %v1095_v35, %v2641_v0 }
 0x20b   :  { %v1225_v46 = vadd.f32 %v1224_v4, %v1223_v63  ;;  %1438 = vpow2.f32 %v915_v8  ;;  %v1028_v63 = vsub.f32 0.0, %v996_v20 }
 0x20c   :  { %1440 = vlog2.f32 %v2614_v43  ;;  %v1097_v43 = vadd.s32 72, %v2629_v45 }
 0x20d   :  { %1442 = vlog2.f32 %v2621_v52 }
 0x20e   :  { %v782_v13 = vpop.xlane.xlu1 %781  ;;  %v779_v27 = vpop.xlane.xlu0 %778  ;;  %vm1163_vm11 = vcmp.lt.s32.totalorder %v1097_v43, %v2641_v0 }
 0x20f   :  { %v866_v31 = vmul.f32 %v782_v13, %v2624_v32  ;;  %v865_v50 = vmul.f32 %v779_v27, %v2619_v36 }
 0x211   :  { %v1058_v61 = vmul.f32 %v1026_v60, %v866_v31  ;;  %v1057_v49 = vmul.f32 %v1025_v26, %v865_v50  ;;  %v2714_v60 = vsub.f32 %v2647_v1, %v367_v6 }
 0x212   :  { %v2685_v11 = vpop.xlane.xlu1 %650  ;;  %v2687_v40 = vpop.xlane.xlu0 %647 }
 0x213   :  { %v1191_v29 = vsel %vm1159_vm7, %v1058_v61, 0.0  ;;  %v1190_v58 = vsel %vm1158_vm8, %v1057_v49, 0.0  ;;  %v1427_v25 = vpop.eup %1426  ;;  %v919_v1 = vmul.f32 1.442695, %v2714_v60 }
 0x214   :  { %v1226_v32 = vsel %vm1218_vm4, %v1190_v58, 0.0  ;;  %v1228_v2 = vsel %vm1218_vm4, %v1191_v29, 0.0  ;;  %v1429_v54 = vpop.eup %1428  ;;  %v965_v7 = vsub.f32 1.0, %v1427_v25 }
 0x215   :  { %v1227_v36 = vadd.f32 %v1226_v32, %v1225_v46  ;;  %v966_v27 = vsub.f32 1.0, %v1429_v54  ;;  %v1431_v48 = vpop.eup %1430  ;;  %v1096_v32 = vadd.s32 64, %v2629_v45 }
 0x216   :  { %v2694_v10 = vpop.xlane.xlu1 %323  ;;  %v2696_v24 = vpop.xlane.xlu0 %320  ;;  %v997_v12 = vmul.f32 %v965_v7, %v965_v7  ;;  %v371_v29 = vmul.f32 0.6931472, %v1431_v48 }
 0x217   :  { %v1229_v51 = vadd.f32 %v1228_v2, %v1227_v36  ;;  %v1433_v50 = vpop.eup %1432  ;;  %v998_v58 = vmul.f32 %v966_v27, %v966_v27  ;;  %vm1162_vm12 = vcmp.lt.s32.totalorder %v1096_v32, %v2641_v0 }
 0x218   :  { %v2726_v36 = vsub.f32 %v2666_v14, %v371_v29  ;;  %v369_v23 = vmul.f32 0.6931472, %v1433_v50  ;;  %v1435_v2 = vpop.eup %1434  ;;  %v1029_v8 = vsub.f32 0.0, %v997_v12 }
 0x219   :  { %v1030_v42 = vsub.f32 0.0, %v998_v58 }
 0x21a   :  { %v788_v17 = vpop.xlane.xlu1 %787  ;;  %v785_v55 = vpop.xlane.xlu0 %784  ;;  %v2729_v35 = vsub.f32 %v2668_v62, %v369_v23  ;;  %v923_v14 = vmul.f32 1.442695, %v2726_v36  ;;  %v373_v62 = vmul.f32 0.6931472, %v1435_v2 }
 0x21b   :  { %v868_v47 = vmul.f32 %v788_v17, %v2579_v56  ;;  %v867_v4 = vmul.f32 %v785_v55, %v2563_v38  ;;  %v917_v56 = vmul.f32 1.442695, %v2635_v28 }
 0x21d   :  { %v1060_v34 = vmul.f32 %v1028_v63, %v868_v47  ;;  %v1059_v39 = vmul.f32 %v1027_v37, %v867_v4  ;;  %1444 = vpow2.f32 %v917_v56  ;;  %v921_v63 = vmul.f32 1.442695, %v2729_v35 }
 0x21e   :  { %v2706_v59 = vpop.xlane.xlu1 %656  ;;  %v2708_v46 = vpop.xlane.xlu0 %653  ;;  %1446 = vlog2.f32 %v2632_v53 }
 0x21f   :  { %v1193_v13 = vsel %vm1161_vm9, %v1060_v34, 0.0  ;;  %v1192_v26 = vsel %vm1160_vm10, %v1059_v39, 0.0  ;;  %1448 = vpow2.f32 %v919_v1  ;;  %v2746_v39 = vsub.f32 %v2687_v40, %v373_v62 }
 0x220   :  { %v1230_v38 = vsel %vm1218_vm4, %v1192_v26, 0.0  ;;  %v1232_v16 = vsel %vm1218_vm4, %v1193_v13, 0.0  ;;  %1450 = vlog2.f32 %v2655_v3  ;;  %v1098_v40 = vadd.s32 80, %v2629_v45 }
 0x221   :  { %v1231_v31 = vadd.f32 %v1230_v38, %v1229_v51  ;;  %v1437_v51 = vpop.eup %1436  ;;  %1452 = vlog2.f32 %v2643_v22  ;;  %v1099_v38 = vadd.s32 88, %v2629_v45 }
 0x222   :  { %v2717_v61 = vpop.xlane.xlu1 %329  ;;  %v2719_v49 = vpop.xlane.xlu0 %326  ;;  %1454 = vpow2.f32 %v923_v14  ;;  %vm1164_vm14 = vcmp.lt.s32.totalorder %v1098_v40, %v2641_v0 }
 0x223   :  { %v1233_v33 = vadd.f32 %v1232_v16, %v1231_v31  ;;  %v1439_v17 = vpop.eup %1438  ;;  %1456 = vlog2.f32 %v2675_v18  ;;  %v925_v18 = vmul.f32 1.442695, %v2746_v39  ;;  %vm1165_vm13 = vcmp.lt.s32.totalorder %v1099_v38, %v2641_v0 }
 0x224   :  { %v968_v4 = vsub.f32 1.0, %v1439_v17  ;;  %v1441_v34 = vpop.eup %1440  ;;  %1458 = vpow2.f32 %v921_v63 }
 0x225   :  { %1460 = vlog2.f32 %v2653_v57  ;;  %v375_v22 = vmul.f32 0.6931472, %v1441_v34  ;;  %v1443_v56 = vpop.eup %1442 }
 0x226   :  { %v794_v41 = vpop.xlane.xlu1 %793  ;;  %v791_v20 = vpop.xlane.xlu0 %790  ;;  %v1000_v26 = vmul.f32 %v968_v4, %v968_v4  ;;  %1462 = vlog2.f32 %v2673_v9  ;;  %v377_v43 = vmul.f32 0.6931472, %v1443_v56 }
 0x227   :  { %v870_v52 = vmul.f32 %v794_v41, %v2611_v21  ;;  %v869_v15 = vmul.f32 %v791_v20, %v2599_v19  ;;  %v967_v19 = vsub.f32 1.0, %v1437_v51  ;;  %v2758_v50 = vsub.f32 %v2685_v11, %v375_v22 }
 0x228   :  { %1464 = vlog2.f32 %v2696_v24  ;;  %v1032_v29 = vsub.f32 0.0, %v1000_v26  ;;  %v2768_v41 = vadd.s32 96, %v2629_v45 }
 0x229   :  { %v1062_v37 = vmul.f32 %v1030_v42, %v870_v52  ;;  %v1061_v55 = vmul.f32 %v1029_v8, %v869_v15  ;;  %v999_v27 = vmul.f32 %v967_v19, %v967_v19  ;;  %1466 = vpow2.f32 %v925_v18 }
 0x22a   :  { %v2738_v25 = vpop.xlane.xlu1 %662  ;;  %v2740_v21 = vpop.xlane.xlu0 %659  ;;  %v927_v24 = vmul.f32 1.442695, %v2758_v50  ;;  %1468 = vlog2.f32 %v2694_v10  ;;  %v2771_v8 = vsub.f32 %v2708_v46, %v377_v43  ;;  %vm1166_vm15 = vcmp.lt.s32.totalorder %v2768_v41, %v2641_v0 }
 0x22b   :  { %v1195_v53 = vsel %vm1163_vm11, %v1062_v37, 0.0  ;;  %v1194_v47 = vsel %vm1162_vm12, %v1061_v55, 0.0  ;;  %v1445_v31 = vpop.eup %1444  ;;  %v1031_v58 = vsub.f32 0.0, %v999_v27  ;;  %1470 = vlog2.f32 %v2719_v49 }
 0x22c   :  { %v1234_v54 = vsel %vm1218_vm4, %v1194_v47, 0.0  ;;  %v1236_v7 = vsel %vm1218_vm4, %v1195_v53, 0.0  ;;  %v1447_v9 = vpop.eup %1446  ;;  %v969_v1 = vsub.f32 1.0, %v1445_v31  ;;  %v2780_v37 = vadd.s32 104, %v2629_v45 }
 0x22d   :  { %v1235_v3 = vadd.f32 %v1234_v54, %v1233_v33  ;;  %v1449_v23 = vpop.eup %1448  ;;  %v379_v52 = vmul.f32 0.6931472, %v1447_v9  ;;  %1472 = vpow2.f32 %v927_v24  ;;  %v929_v47 = vmul.f32 1.442695, %v2771_v8 }
 0x22e   :  { %v2750_v6 = vpop.xlane.xlu1 %335  ;;  %v333_v13 = vpop.xlane.xlu0 %332  ;;  %v1001_v17 = vmul.f32 %v969_v1, %v969_v1  ;;  %v970_v14 = vsub.f32 1.0, %v1449_v23  ;;  %1474 = vlog2.f32 %v2717_v61  ;;  %vm1167_vm1 = vcmp.lt.s32.totalorder %v2780_v37, %v2641_v0 }
 0x22f   :  { %v1237_v48 = vadd.f32 %v1236_v7, %v1235_v3  ;;  %v2783_v49 = vsub.f32 %v2706_v59, %v379_v52  ;;  %1476 = vlog2.f32 %v333_v13  ;;  %v2794_v3 = vadd.s32 112, %v2629_v45 }
 0x230   :  { %v1002_v26 = vmul.f32 %v970_v14, %v970_v14  ;;  %v2799_v61 = vadd.s32 120, %v2629_v45  ;;  %v2802_v27 = vadd.s32 128, %v2629_v45  ;;  %v1033_v40 = vsub.f32 0.0, %v1001_v17 }
 0x231   :  { %1478 = vpow2.f32 %v929_v47  ;;  %vm1168_vm3 = vcmp.lt.s32.totalorder %v2794_v3, %v2641_v0  ;;  %v2816_v9 = vadd.s32 136, %v2629_v45 }
 0x232   :  { %v800_v16 = vpop.xlane.xlu1 %799  ;;  %v797_v12 = vpop.xlane.xlu0 %796  ;;  %1480 = vlog2.f32 %v2750_v6  ;;  %v1034_v43 = vsub.f32 0.0, %v1002_v26  ;;  %vm1169_vm0 = vcmp.lt.s32.totalorder %v2799_v61, %v2641_v0  ;;  %vm1170_vm2 = vcmp.lt.s32.totalorder %v2802_v27, %v2641_v0 }
 0x233   :  { %v872_v57 = vmul.f32 %v800_v16, %v2626_v30  ;;  %v871_v33 = vmul.f32 %v797_v12, %v2616_v44  ;;  %v1451_v44 = vpop.eup %1450  ;;  %vm1171_vm5 = vcmp.lt.s32.totalorder %v2816_v9, %v2641_v0 }
 0x234   :  { %v1453_v42 = vpop.eup %1452  ;;  %v383_v55 = vmul.f32 0.6931472, %v1451_v44 }
 0x235   :  { %v1064_v32 = vmul.f32 %v1032_v29, %v872_v57  ;;  %v1063_v11 = vmul.f32 %v1031_v58, %v871_v33  ;;  %v1455_v46 = vpop.eup %1454  ;;  %v381_v59 = vmul.f32 0.6931472, %v1453_v42 }
 0x236   :  { %v669_v30 = vpop.xlane.xlu1 %668  ;;  %v666_v2 = vpop.xlane.xlu0 %665  ;;  %v2791_v34 = vsub.f32 %v2738_v25, %v383_v55  ;;  %v931_v25 = vmul.f32 1.442695, %v2783_v49  ;;  %v972_v12 = vsub.f32 1.0, %v1455_v46 }
 0x237   :  { %v1197_v20 = vsel %vm1165_vm13, %v1064_v32, 0.0  ;;  %v1196_v51 = vsel %vm1164_vm14, %v1063_v11, 0.0  ;;  %v1457_v53 = vpop.eup %1456  ;;  %v2806_v22 = vsub.f32 %v2740_v21, %v381_v59 }
 0x238   :  { %v1238_v10 = vsel %vm1218_vm4, %v1196_v51, 0.0  ;;  %v1240_v62 = vsel %vm1218_vm4, %v1197_v20, 0.0  ;;  %v1459_v54 = vpop.eup %1458  ;;  %v387_v13 = vmul.f32 0.6931472, %v1457_v53  ;;  %v935_v57 = vmul.f32 1.442695, %v2791_v34 }
 0x239   :  { %v1239_v15 = vadd.f32 %v1238_v10, %v1237_v48  ;;  %v1461_v7 = vpop.eup %1460  ;;  %v971_v16 = vsub.f32 1.0, %v1459_v54  ;;  %1482 = vpow2.f32 %v931_v25  ;;  %v1004_v51 = vmul.f32 %v972_v12, %v972_v12 }
 0x23a   :  { %v672_v19 = vpop.xlane.xlu1 %671  ;;  %v339_v63 = vpop.xlane.xlu0 %338  ;;  %v2811_v29 = vsub.f32 %v669_v30, %v387_v13  ;;  %v385_v58 = vmul.f32 0.6931472, %v1461_v7  ;;  %1484 = vpow2.f32 %v935_v57 }
 0x23b   :  { %v1241_v4 = vadd.f32 %v1240_v62, %v1239_v15  ;;  %v1463_v48 = vpop.eup %1462  ;;  %v1003_v20 = vmul.f32 %v971_v16, %v971_v16  ;;  %1486 = vlog2.f32 %v339_v63  ;;  %v1036_v57 = vsub.f32 0.0, %v1004_v51 }
 0x23c   :  { %v1465_v18 = vpop.eup %1464  ;;  %v389_v21 = vmul.f32 0.6931472, %v1463_v48  ;;  %v2819_v11 = vsub.f32 %v666_v2, %v385_v58  ;;  %v939_v10 = vmul.f32 1.442695, %v2811_v29 }
 0x23d   :  { %v1467_v32 = vpop.eup %1466  ;;  %v391_v1 = vmul.f32 0.6931472, %v1465_v18  ;;  %v1035_v59 = vsub.f32 0.0, %v1003_v20  ;;  %v2862_v20 = vadd.s32 168, %v2629_v45 }
 0x23e   :  { %v675_v38 = vpop.xlane.xlu1 %674  ;;  %v803_v56 = vpop.xlane.xlu0 %802  ;;  %v973_v41 = vsub.f32 1.0, %v1467_v32  ;;  %v2832_v14 = vsub.f32 %v672_v19, %v389_v21 }
 0x23f   :  { %v873_v31 = vmul.f32 %v803_v56, %v2635_v28  ;;  %v933_v28 = vmul.f32 1.442695, %v2806_v22  ;;  %v1469_v24 = vpop.eup %1468  ;;  %v2826_v42 = vsub.f32 %v675_v38, %v391_v1  ;;  %v2847_v38 = vadd.s32 144, %v2629_v45 }
 0x240   :  { %v1471_v52 = vpop.eup %1470  ;;  %v393_v46 = vmul.f32 0.6931472, %v1469_v24  ;;  %v1005_v18 = vmul.f32 %v973_v41, %v973_v41  ;;  %vm1175_vm8 = vcmp.lt.s32.totalorder %v2862_v20, %v2641_v0 }
 0x241   :  { %v1065_v33 = vmul.f32 %v1033_v40, %v873_v31  ;;  %1488 = vpow2.f32 %v933_v28  ;;  %v1473_v53 = vpop.eup %1472  ;;  %v395_v54 = vmul.f32 0.6931472, %v1471_v52  ;;  %v943_v7 = vmul.f32 1.442695, %v2826_v42 }
 0x242   :  { %v678_v6 = vpop.xlane.xlu1 %677  ;;  %v806_v23 = vpop.xlane.xlu0 %805  ;;  %1490 = vpow2.f32 %v939_v10  ;;  %v974_v31 = vsub.f32 1.0, %v1473_v53  ;;  %vm1172_vm6 = vcmp.lt.s32.totalorder %v2847_v38, %v2641_v0  ;;  %v2924_v38 = vadd.s32 192, %v2629_v45 }
 0x243   :  { %v1198_v30 = vsel %vm1166_vm15, %v1065_v33, 0.0  ;;  %v874_v44 = vmul.f32 %v806_v23, %v2714_v60  ;;  %v937_v60 = vmul.f32 1.442695, %v2819_v11  ;;  %v2839_v26 = vsub.f32 %v678_v6, %v393_v46 }
 0x244   :  { %v1242_v2 = vsel %vm1218_vm4, %v1198_v30, 0.0  ;;  %vm1178_vm13 = vcmp.lt.s32.totalorder %v2924_v38, %v2641_v0 }
 0x245   :  { %v1243_v15 = vadd.f32 %v1242_v2, %v1241_v4  ;;  %v1066_v17 = vmul.f32 %v1034_v43, %v874_v44  ;;  %v1475_v4 = vpop.eup %1474  ;;  %1492 = vpow2.f32 %v937_v60  ;;  %v945_v33 = vmul.f32 1.442695, %v2839_v26 }
 0x246   :  { %v681_v55 = vpop.xlane.xlu1 %680  ;;  %v809_v62 = vpop.xlane.xlu0 %808  ;;  %v397_v12 = vmul.f32 0.6931472, %v1475_v4  ;;  %1494 = vpow2.f32 %v943_v7  ;;  %v1006_v44 = vmul.f32 %v974_v31, %v974_v31  ;;  %v2874_v60 = vadd.s32 152, %v2629_v45 }
 0x247   :  { %v1199_v47 = vsel %vm1167_vm1, %v1066_v17, 0.0  ;;  %v875_v63 = vmul.f32 %v809_v62, %v2729_v35  ;;  %v1477_v48 = vpop.eup %1476  ;;  %v2844_v13 = vsub.f32 %v681_v55, %v395_v54  ;;  %v941_v35 = vmul.f32 1.442695, %v2832_v14 }
 0x248   :  { %v1244_v19 = vsel %vm1218_vm4, %v1199_v47, 0.0  ;;  %v1479_v21 = vpop.eup %1478  ;;  %v399_v32 = vmul.f32 0.6931472, %v1477_v48  ;;  %v1038_v54 = vsub.f32 0.0, %v1006_v44  ;;  %v2879_v4 = vadd.s32 184, %v2629_v45 }
 0x249   :  { %v1245_v25 = vadd.f32 %v1244_v19, %v1243_v15  ;;  %v1067_v37 = vmul.f32 %v1035_v59, %v875_v63  ;;  %v1481_v28 = vpop.eup %1480  ;;  %v947_v1 = vmul.f32 1.442695, %v2844_v13  ;;  %1496 = vpow2.f32 %v941_v35 }
 0x24a   :  { %v684_v40 = vpop.xlane.xlu1 %683  ;;  %v812_v56 = vpop.xlane.xlu0 %811  ;;  %v975_v15 = vsub.f32 1.0, %v1479_v21  ;;  %1498 = vpow2.f32 %v945_v33  ;;  %v401_v41 = vmul.f32 0.6931472, %v1481_v28  ;;  %vm1173_vm7 = vcmp.lt.s32.totalorder %v2874_v60, %v2641_v0 }
 0x24b   :  { %v1200_v16 = vsel %vm1168_vm3, %v1067_v37, 0.0  ;;  %v876_v58 = vmul.f32 %v812_v56, %v2726_v36  ;;  %v2859_v3 = vsub.f32 %v684_v40, %v397_v12  ;;  %v1037_v36 = vsub.f32 0.0, %v1005_v18  ;;  %v1483_v51 = vpop.eup %1482 }
 0x24c   :  { %v1246_v43 = vsel %vm1218_vm4, %v1200_v16, 0.0  ;;  %v1485_v46 = vpop.eup %1484  ;;  %1500 = vpow2.f32 %v947_v1  ;;  %v976_v63 = vsub.f32 1.0, %v1483_v51  ;;  %v1007_v37 = vmul.f32 %v975_v15, %v975_v15 }
 0x24d   :  { %v1247_v6 = vadd.f32 %v1246_v43, %v1245_v25  ;;  %v1068_v23 = vmul.f32 %v1036_v57, %v876_v58  ;;  %v949_v61 = vmul.f32 1.442695, %v2859_v3  ;;  %v1487_v53 = vpop.eup %1486  ;;  %v978_v40 = vsub.f32 1.0, %v1485_v46 }
 0x24e   :  { %v687_v24 = vpop.xlane.xlu1 %686  ;;  %v815_v30 = vpop.xlane.xlu0 %814  ;;  %v2891_v56 = vadd.s32 160, %v2629_v45  ;;  %v2894_v18 = vadd.s32 200, %v2629_v45  ;;  %v403_v12 = vmul.f32 0.6931472, %v1487_v53  ;;  %v1008_v21 = vmul.f32 %v976_v63, %v976_v63 }
 0x24f   :  { %v1201_v52 = vsel %vm1169_vm0, %v1068_v23, 0.0  ;;  %v2867_v10 = vsub.f32 %v687_v24, %v399_v32  ;;  %v877_v2 = vmul.f32 %v815_v30, %v2746_v39  ;;  %v1489_v7 = vpop.eup %1488  ;;  %1502 = vpow2.f32 %v949_v61 }
 0x250   :  { %v1248_v17 = vsel %vm1218_vm4, %v1201_v52, 0.0  ;;  %v1491_v31 = vpop.eup %1490  ;;  %v977_v33 = vsub.f32 1.0, %v1489_v7  ;;  %v1039_v1 = vsub.f32 0.0, %v1007_v37  ;;  %vm1174_vm9 = vcmp.lt.s32.totalorder %v2891_v56, %v2641_v0 }
 0x251   :  { %v1249_v55 = vadd.f32 %v1248_v17, %v1247_v6  ;;  %v1069_v62 = vmul.f32 %v1037_v36, %v877_v2  ;;  %v951_v39 = vmul.f32 1.442695, %v2867_v10  ;;  %v980_v24 = vsub.f32 1.0, %v1491_v31 }
 0x252   :  { %v690_v47 = vpop.xlane.xlu1 %689  ;;  %v818_v59 = vpop.xlane.xlu0 %817  ;;  %v2909_v36 = vadd.s32 176, %v2629_v45  ;;  %v1010_v52 = vmul.f32 %v978_v40, %v978_v40  ;;  %v1040_v2 = vsub.f32 0.0, %v1008_v21  ;;  %v1009_v17 = vmul.f32 %v977_v33, %v977_v33 }
 0x253   :  { %v1202_v19 = vsel %vm1170_vm2, %v1069_v62, 0.0  ;;  %v2884_v48 = vsub.f32 %v690_v47, %v401_v41  ;;  %v878_v25 = vmul.f32 %v818_v59, %v2758_v50  ;;  %1504 = vpow2.f32 %v951_v39  ;;  %v1493_v43 = vpop.eup %1492 }
 0x254   :  { %v1250_v35 = vsel %vm1218_vm4, %v1202_v19, 0.0  ;;  %v1495_v30 = vpop.eup %1494  ;;  %v979_v41 = vsub.f32 1.0, %v1493_v43  ;;  %vm1177_vm10 = vcmp.lt.s32.totalorder %v2879_v4, %v2641_v0  ;;  %v1012_v39 = vmul.f32 %v980_v24, %v980_v24 }
 0x255   :  { %v1251_v27 = vadd.f32 %v1250_v35, %v1249_v55  ;;  %v1070_v16 = vmul.f32 %v1038_v54, %v878_v25  ;;  %v953_v50 = vmul.f32 1.442695, %v2884_v48  ;;  %v982_v47 = vsub.f32 1.0, %v1495_v30 }
 0x256   :  { %v693_v57 = vpop.xlane.xlu1 %692  ;;  %v821_v58 = vpop.xlane.xlu0 %820  ;;  %v2921_v54 = vadd.s32 216, %v2629_v45  ;;  %v1042_v7 = vsub.f32 0.0, %v1010_v52  ;;  %v1011_v35 = vmul.f32 %v979_v41, %v979_v41  ;;  %vm1176_vm11 = vcmp.lt.s32.totalorder %v2909_v36, %v2641_v0 }
 0x257   :  { %v1203_v32 = vsel %vm1171_vm5, %v1070_v16, 0.0  ;;  %v2900_v28 = vsub.f32 %v693_v57, %v403_v12  ;;  %v879_v6 = vmul.f32 %v821_v58, %v2771_v8  ;;  %1506 = vpow2.f32 %v953_v50  ;;  %v1497_v46 = vpop.eup %1496 }
 0x258   :  { %v1252_v23 = vsel %vm1218_vm4, %v1203_v32, 0.0  ;;  %v1499_v59 = vpop.eup %1498  ;;  %v981_v40 = vsub.f32 1.0, %v1497_v46  ;;  %v1044_v57 = vsub.f32 0.0, %v1012_v39  ;;  %vm1179_vm12 = vcmp.lt.s32.totalorder %v2894_v18, %v2641_v0 }
 0x259   :  { %v1253_v9 = vadd.f32 %v1252_v23, %v1251_v27  ;;  %v955_v44 = vmul.f32 1.442695, %v2900_v28  ;;  %v1071_v51 = vmul.f32 %v1039_v1, %v879_v6  ;;  %v1014_v58 = vmul.f32 %v982_v47, %v982_v47 }
 0x25a   :  { %v830_v8 = vpop.xlane.xlu1 %829  ;;  %v824_v15 = vpop.xlane.xlu0 %823  ;;  %v983_v21 = vsub.f32 1.0, %v1499_v59  ;;  %v1114_v24 = vadd.s32 208, %v2629_v45  ;;  %vm1181_vm14 = vcmp.lt.s32.totalorder %v2921_v54, %v2641_v0  ;;  %v1118_v18 = vadd.s32 240, %v2629_v45 }
 0x25b   :  { %1508 = vpow2.f32 %v955_v44  ;;  %v1204_v61 = vsel %vm1172_vm6, %v1071_v51, 0.0  ;;  %v882_v55 = vmul.f32 %v830_v8, %v2791_v34  ;;  %v880_v62 = vmul.f32 %v824_v15, %v2783_v49  ;;  %v1501_v34 = vpop.eup %1500 }
 0x25c   :  { %v1254_v53 = vsel %vm1218_vm4, %v1204_v61, 0.0  ;;  %v1041_v49 = vsub.f32 0.0, %v1009_v17  ;;  %v984_v32 = vsub.f32 1.0, %v1501_v34  ;;  %v1503_v60 = vpop.eup %1502  ;;  %v1013_v15 = vmul.f32 %v981_v40, %v981_v40 }
 0x25d   :  { %v1255_v63 = vadd.f32 %v1254_v53, %v1253_v9  ;;  %v1072_v19 = vmul.f32 %v1040_v2, %v880_v62  ;;  %v1074_v31 = vmul.f32 %v1042_v7, %v882_v55  ;;  %v1046_v2 = vsub.f32 0.0, %v1014_v58 }
 0x25e   :  { %v836_v25 = vpop.xlane.xlu1 %835  ;;  %v827_v37 = vpop.xlane.xlu0 %826  ;;  %v1015_v17 = vmul.f32 %v983_v21, %v983_v21  ;;  %v1016_v20 = vmul.f32 %v984_v32, %v984_v32  ;;  %v985_v61 = vsub.f32 1.0, %v1503_v60  ;;  %v1116_v53 = vadd.s32 224, %v2629_v45 }
 0x25f   :  { %v1205_v27 = vsel %vm1173_vm7, %v1072_v19, 0.0  ;;  %v884_v16 = vmul.f32 %v836_v25, %v2811_v29  ;;  %v881_v12 = vmul.f32 %v827_v37, %v2806_v22  ;;  %v1043_v29 = vsub.f32 0.0, %v1011_v35 }
 0x260   :  { %v1256_v50 = vsel %vm1218_vm4, %v1205_v27, 0.0  ;;  %v2939_v22 = vadd.s32 232, %v2629_v45  ;;  %v1505_v30 = vpop.eup %1504  ;;  %v1207_v9 = vsel %vm1175_vm8, %v1074_v31, 0.0  ;;  %v1045_v25 = vsub.f32 0.0, %v1013_v15 }
 0x261   :  { %v1257_v33 = vadd.f32 %v1256_v50, %v1255_v63  ;;  %v1073_v43 = vmul.f32 %v1041_v49, %v881_v12  ;;  %v1076_v1 = vmul.f32 %v1044_v57, %v884_v16  ;;  %v1260_v55 = vsel %vm1218_vm4, %v1207_v9, 0.0 }
 0x262   :  { %v842_v6 = vpop.xlane.xlu1 %841  ;;  %v833_v23 = vpop.xlane.xlu0 %832  ;;  %v986_v62 = vsub.f32 1.0, %v1505_v30  ;;  %v1047_v49 = vsub.f32 0.0, %v1015_v17  ;;  %v1048_v40 = vsub.f32 0.0, %v1016_v20  ;;  %v1017_v31 = vmul.f32 %v985_v61, %v985_v61 }
 0x263   :  { %v1206_v44 = vsel %vm1174_vm9, %v1073_v43, 0.0  ;;  %v886_v51 = vmul.f32 %v842_v6, %v2826_v42  ;;  %v883_v52 = vmul.f32 %v833_v23, %v2819_v11  ;;  %v1209_v42 = vsel %vm1177_vm10, %v1076_v1, 0.0 }
 0x264   :  { %v1258_v8 = vsel %vm1218_vm4, %v1206_v44, 0.0  ;;  %v1507_v39 = vpop.eup %1506  ;;  %v1264_v37 = vsel %vm1218_vm4, %v1209_v42, 0.0  ;;  %v1018_v12 = vmul.f32 %v986_v62, %v986_v62  ;;  %vm1180_vm15 = vcmp.lt.s32.totalorder %v1114_v24, %v2641_v0 }
 0x265   :  { %v1259_v41 = vadd.f32 %v1258_v8, %v1257_v33  ;;  %v1075_v46 = vmul.f32 %v1043_v29, %v883_v52  ;;  %v1078_v47 = vmul.f32 %v1046_v2, %v886_v51  ;;  %v987_v57 = vsub.f32 1.0, %v1507_v39 }
 0x266   :  { %v848_v56 = vpop.xlane.xlu1 %847  ;;  %v839_v11 = vpop.xlane.xlu0 %838  ;;  %vm1182_vm1 = vcmp.lt.s32.totalorder %v1116_v53, %v2641_v0  ;;  %v1049_v1 = vsub.f32 0.0, %v1017_v31  ;;  %vm1183_vm3 = vcmp.lt.s32.totalorder %v2939_v22, %v2641_v0  ;;  %v1119_v15 = vadd.s32 248, %v2629_v45 }
 0x267   :  { %v1261_v59 = vadd.f32 %v1260_v55, %v1259_v41  ;;  %v1208_v63 = vsel %vm1176_vm11, %v1075_v46, 0.0  ;;  %v888_v7 = vmul.f32 %v848_v56, %v2844_v13  ;;  %v885_v4 = vmul.f32 %v839_v11, %v2832_v14 }
 0x268   :  { %v1509_v19 = vpop.eup %1508  ;;  %v1262_v34 = vsel %vm1218_vm4, %v1208_v63, 0.0  ;;  %v1211_v13 = vsel %vm1179_vm12, %v1078_v47, 0.0  ;;  %v1019_v44 = vmul.f32 %v987_v57, %v987_v57  ;;  %vm1184_vm0 = vcmp.lt.s32.totalorder %v1118_v18, %v2641_v0 }
 0x269   :  { %v1263_v35 = vadd.f32 %v1262_v34, %v1261_v59  ;;  %v1077_v27 = vmul.f32 %v1045_v25, %v885_v4  ;;  %v988_v36 = vsub.f32 1.0, %v1509_v19  ;;  %v1080_v58 = vmul.f32 %v1048_v40, %v888_v7 }
 0x26a   :  { %v854_v16 = vpop.xlane.xlu1 %853  ;;  %v845_v50 = vpop.xlane.xlu0 %844  ;;  %v1268_v6 = vsel %vm1218_vm4, %v1211_v13, 0.0  ;;  %v1051_v61 = vsub.f32 0.0, %v1019_v44  ;;  %vm1185_vm2 = vcmp.lt.s32.totalorder %v1119_v15, %v2641_v0  ;;  %vm1291_vm5 = vcmp.eq.s32.totalorder %v2629_v45, 0 }
 0x26b   :  { %v1265_v21 = vadd.f32 %v1264_v37, %v1263_v35  ;;  %v887_v14 = vmul.f32 %v845_v50, %v2839_v26  ;;  %v1210_v33 = vsel %vm1178_vm13, %v1077_v27, 0.0  ;;  %v890_v43 = vmul.f32 %v854_v16, %v2867_v10 }
 0x26c   :  { %v1266_v32 = vsel %vm1218_vm4, %v1210_v33, 0.0  ;;  %v1050_v26 = vsub.f32 0.0, %v1018_v12  ;;  %v1020_v30 = vmul.f32 %v988_v36, %v988_v36  ;;  %v1213_v10 = vsel %vm1181_vm14, %v1080_v58, 0.0 }
 0x26d   :  { %v1079_v60 = vmul.f32 %v1047_v49, %v887_v14  ;;  %v1267_v29 = vadd.f32 %v1266_v32, %v1265_v21  ;;  %vm1292_vm6 = vcmp.eq.s32.totalorder %v1997_v5, 0 }
 0x26e   :  { %v860_v23 = vpop.xlane.xlu1 %859  ;;  %v851_v38 = vpop.xlane.xlu0 %850  ;;  %v1082_v51 = vmul.f32 %v1050_v26, %v890_v43  ;;  %v1052_v46 = vsub.f32 0.0, %v1020_v30  ;;  %vm1293_vm7 = vmand %vm1291_vm5, %vm1292_vm6 }
 0x26f   :  { %v1212_v24 = vsel %vm1180_vm15, %v1079_v60, 0.0  ;;  %v889_v9 = vmul.f32 %v851_v38, %v2859_v3  ;;  %v1269_v52 = vadd.f32 %v1268_v6, %v1267_v29  ;;  %v892_v2 = vmul.f32 %v860_v23, %v2900_v28 }
 0x270   :  { %v1270_v8 = vsel %vm1218_vm4, %v1212_v24, 0.0  ;;  %v1272_v3 = vsel %vm1218_vm4, %v1213_v10, 0.0  ;;  %v1215_v28 = vsel %vm1183_vm3, %v1082_v51, 0.0 }
 0x271   :  { %v1081_v17 = vmul.f32 %v1049_v1, %v889_v9  ;;  %v1271_v41 = vadd.f32 %v1270_v8, %v1269_v52  ;;  %v1084_v42 = vmul.f32 %v1052_v46, %v892_v2  ;;  %v1276_v39 = vsel %vm1218_vm4, %v1215_v28, 0.0 }
 0x272   :  { %v857_v54 = vpop.xlane.xlu0 %856 }
 0x273   :  { %v1214_v20 = vsel %vm1182_vm1, %v1081_v17, 0.0  ;;  %v891_v55 = vmul.f32 %v857_v54, %v2884_v48  ;;  %v1273_v56 = vadd.f32 %v1272_v3, %v1271_v41  ;;  %v1217_v59 = vsel %vm1185_vm2, %v1084_v42, 0.0 }
 0x274   :  { %v1274_v22 = vsel %vm1218_vm4, %v1214_v20, 0.0  ;;  %v1280_v19 = vsel %vm1218_vm4, %v1217_v59, 0.0 }
 0x275   :  { %v1083_v11 = vmul.f32 %v1051_v61, %v891_v55  ;;  %v1275_v62 = vadd.f32 %v1274_v22, %v1273_v56 }
 0x277   :  { %v1216_v47 = vsel %vm1184_vm0, %v1083_v11, 0.0  ;;  %v1277_v53 = vadd.f32 %v1276_v39, %v1275_v62 }
 0x278   :  { %v1278_v63 = vsel %vm1218_vm4, %v1216_v47, 0.0 }
 0x279   :  { %v1279_v7 = vadd.f32 %v1278_v63, %v1277_v53 }
 0x27b   :  { %v1281_v48 = vadd.f32 %v1280_v19, %v1279_v7 }
 0x27d   :  { %1282 = vadd.xlane.f32.xlu0 %v1281_v48 }
 0x306   :  { %v1283_v34 = vpop.xlane.xlu0 %1282 }
 0x307   :  { %v1284_v25 = vrot.slane %v1283_v34, 4 }
 0x309   :  { %v1285_v4 = vadd.f32 %v1284_v25, %v1283_v34 }
 0x30b   :  { %v1286_v49 = vrot.slane %v1285_v4, 2 }
 0x30d   :  { %v1287_v37 = vadd.f32 %v1286_v49, %v1285_v4 }
 0x30f   :  { %v1288_v0 = vrot.slane %v1287_v37, 1 }
 0x311   :  { %v1289_v35 = vadd.f32 %v1288_v0, %v1287_v37 }
 0x313   :  { %1312 = vpush %v1289_v35 }
 0x344   :  { %s1313_s13 = spop %1312 }
 0x345   :  { %v1294_v40 = vstv %s1313_s13 }
 0x346   :  { %v1295_v31 = vsel %vm1293_vm7, %v1294_v40, 0.0 }
 0x347   :  { %1296 = vst [vmem:[#allocation3] sm:$0xff] %v1295_v31 }
 0x348   :  { %1521 = shalt.err (!%p1518_p4)
}
 0x349   :  { %1306 = dma.vmem_to_hbm [thread:$0]  %s1304_s12, 128, %s3006_s4, [#allocation4]  }
 0x34a   :  { %1530 = dma.done.wait [#allocation4], 128  }
 0x34b   :  { %1531 = vsyncadd [#allocation4], 4294967168 }
 0x34c   :  { %1310 = vsyncpa [#allocation4], 1 }

</bundles_post_ra>
